<compile_context>
chip_gen: v6e
topology: v6e:2x2x1
jax: 0.10.0
libtpu: 0.0.40
codegen_flags: <defaults>
</compile_context>

<pallas_src>
import functools

import jax
import jax.numpy as jnp
from jax.experimental import pallas as pl
from jax.experimental.pallas import tpu as pltpu


def _pick_tile(n, cap, align):
    """Largest tile t <= cap with t % align == 0 and n % t == 0; falls back to n."""
    if n <= cap:
        return n
    t = (cap // align) * align
    while t >= align:
        if n % t == 0:
            return t
        t -= align
    return n


# ---------------------------------------------------------------------------
# Kernel 1: fused knn  (pairwise -||xi - xj||^2 + per-row top-k, all in VMEM)
#   grid = (B, N // TI);  rows come in points-major [TI, 3], columns lane-major [3, N]
# ---------------------------------------------------------------------------
def _knn_kernel(xi_ref, xj_ref, idx_ref, *, k):
    xi = xi_ref[0]                                    # [TI, 3]
    xj = xj_ref[0]                                    # [3, N]  (N in the lane dim)
    ti = xi.shape[0]
    n = xj.shape[1]

    # Gram matrix via 3 rank-1 VPU broadcasts (a depth-3 MXU contraction would use
    # <3% of the systolic array and pay push/pop latency for nothing).
    gram = xi[:, 0:1] * xj[0:1, :]
    gram = gram + xi[:, 1:2] * xj[1:2, :]
    gram = gram + xi[:, 2:3] * xj[2:3, :]

    sq_i = jnp.sum(xi * xi, axis=1, keepdims=True)    # [TI, 1]
    sq_j = jnp.sum(xj * xj, axis=0, keepdims=True)    # [1, N]  (sublane reduce)
    scores = 2.0 * gram - sq_i - sq_j                 # -||xi - xj||^2, [TI, N]

    lane = jax.lax.broadcasted_iota(jnp.int32, (ti, n), 1)
    cols = []
    for _ in range(k):                                # k is small & static: unrolled
        m = jnp.max(scores, axis=-1, keepdims=True)                   # row max
        sel = jnp.min(jnp.where(scores == m, lane, n),
                      axis=-1, keepdims=True)                         # argmax, lowest index wins ties
        cols.append(sel)
        scores = jnp.where(lane == sel, -jnp.inf, scores)             # knock out the winner
    idx_ref[0] = jnp.concatenate(cols, axis=1)        # [TI, k] int32


def knn_indices(x_nlast, x_cfirst, k):
    """x_nlast: [B, N, 3]; x_cfirst: [B, 3, N] -> idx2: [B, N, k] int32."""
    B, N, C = x_nlast.shape
    ti = _pick_tile(N, 256, 8)
    return pl.pallas_call(
        functools.partial(_knn_kernel, k=k),
        out_shape=jax.ShapeDtypeStruct((B, N, k), jnp.int32),
        grid=(B, N // ti),
        in_specs=[
            pl.BlockSpec((1, ti, C), lambda b, i: (b, i, 0)),   # row tile (points-major)
            pl.BlockSpec((1, C, N), lambda b, i: (b, 0, 0)),    # all columns, lane-major N (DMA'd once per batch)
        ],
        out_specs=pl.BlockSpec((1, ti, k), lambda b, i: (b, i, 0)),
        compiler_params=pltpu.CompilerParams(
            dimension_semantics=("parallel", "parallel"),
            vmem_limit_bytes=48 * 1024 * 1024),
    )(x_nlast, x_cfirst)


# ---------------------------------------------------------------------------
# Kernel 2: fused DGCNN edge-MLP stack, tiled over points.
#   grid = (B, N // TN); rel block (1, TN*K, 3); output written channels-first
#   (1, E, TN) so the stores are lane-dense over the point dimension.
# ---------------------------------------------------------------------------
def _dgcnn_kernel(rel_ref, w1, b1, w2, b2, w3, b3, w4, b4, w5t, b5, out_ref, *, k):
    x = rel_ref[0]                                    # [TN*K, 3]
    nk = x.shape[0]
    tn = nk // k

    def mxu_layer(h, w_ref, b_ref):
        y = jnp.dot(h, w_ref[...], preferred_element_type=jnp.float32)
        return jnp.maximum(y + b_ref[...], 0.0)

    # Layer 1 (Cin=3): three rank-1 VPU updates instead of a depth-3 MXU matmul.
    w1a = w1[...]                                     # [3, 32]
    h1 = x[:, 0:1] * w1a[0:1, :]
    h1 = h1 + x[:, 1:2] * w1a[1:2, :]
    h1 = h1 + x[:, 2:3] * w1a[2:3, :]
    h1 = jnp.maximum(h1 + b1[...], 0.0)                           # [TN*K, 32]
    x1 = jnp.max(h1.reshape(tn, k, h1.shape[1]), axis=1)          # [TN, 32]  (K-max pool)

    h2 = mxu_layer(h1, w2, b2)                                    # [TN*K, 32]
    x2 = jnp.max(h2.reshape(tn, k, h2.shape[1]), axis=1)
    h3 = mxu_layer(h2, w3, b3)                                    # [TN*K, 64]
    x3 = jnp.max(h3.reshape(tn, k, h3.shape[1]), axis=1)
    h4 = mxu_layer(h3, w4, b4)                                    # [TN*K, 128]
    x4 = jnp.max(h4.reshape(tn, k, h4.shape[1]), axis=1)

    cat = jnp.concatenate([x1, x2, x3, x4], axis=-1)              # [TN, 256]

    # Final layer emitted channels-first: w5t [E,256] contracted with cat [TN,256]
    # along the 256 axis -> [E, TN]; no in-kernel transpose, lane-dense store over N.
    y5 = jax.lax.dot_general(w5t[...], cat, (((1,), (1,)), ((), ())),
                             preferred_element_type=jnp.float32)
    out_ref[0] = jnp.maximum(y5 + b5[...], 0.0).astype(out_ref.dtype)


def dgcnn_forward(rel_flat, params, *, k, num_points):
    """rel_flat: [B, N*K, 3] -> features [B, E, N] (channels-first)."""
    B, NK, C = rel_flat.shape
    E = params[8].shape[0]                            # w5t: [E, 256]
    tn = _pick_tile(num_points, 256, 128)

    in_specs = [pl.BlockSpec((1, tn * k, C), lambda b, n: (b, n, 0))]
    for p in params:                                  # weights/biases stay VMEM-resident
        in_specs.append(pl.BlockSpec(p.shape, lambda b, n: (0, 0)))

    return pl.pallas_call(
        functools.partial(_dgcnn_kernel, k=k),
        out_shape=jax.ShapeDtypeStruct((B, E, num_points), jnp.float32),
        grid=(B, num_points // tn),
        in_specs=in_specs,
        out_specs=pl.BlockSpec((1, E, tn), lambda b, n: (b, 0, n)),
        compiler_params=pltpu.CompilerParams(
            dimension_semantics=("parallel", "parallel"),
            vmem_limit_bytes=48 * 1024 * 1024),
    )(rel_flat, *params)


# ---------------------------------------------------------------------------
# Parameter construction (deterministic, in-script).  Conv weights are stored
# as [Cin, Cout] (last layer pre-transposed to [E, 256]); eval-mode BatchNorm
# (mean=0, var=1, gamma=1, beta=0, eps=1e-5) is folded in.
# ---------------------------------------------------------------------------
def init_params(key, emb_dims=32):
    dims = [(3, 32), (32, 32), (32, 64), (64, 128), (256, emb_dims)]
    eps = 1e-5
    params = []
    for i, (cin, cout) in enumerate(dims):
        key, sub = jax.random.split(key)
        w = jax.random.normal(sub, (cin, cout), jnp.float32) * (1.0 / jnp.sqrt(cin))
        gamma = jnp.ones((cout,), jnp.float32)
        beta = jnp.zeros((cout,), jnp.float32)
        rmean = jnp.zeros((cout,), jnp.float32)
        rvar = jnp.ones((cout,), jnp.float32)
        scale = gamma / jnp.sqrt(rvar + eps)
        w_folded = w * scale[None, :]
        b_folded = beta - rmean * scale
        if i == len(dims) - 1:
            # Final layer stored pre-transposed so the kernel emits [E, TN] directly.
            params += [w_folded.T, b_folded.reshape(cout, 1)]
        else:
            params += [w_folded, b_folded.reshape(1, cout)]
    return params


# ---------------------------------------------------------------------------
# feature_extractor.forward equivalent
# ---------------------------------------------------------------------------
@functools.partial(jax.jit, static_argnums=(1,))
def feature_extractor_forward(x, k, params):
    """
    Args:
      x: [B, 3, N] float32 point clouds
      k: number of nearest neighbors (static)
    Returns:
      features:   [B, emb_dims, N]
      idx:        [B*N*k] int32  (batch-offset flattened neighbor indices)
      knn_points: [B, N, k, 3]
      idx2:       [B, N, k] int32
    """
    B, C, N = x.shape
    x_nlast = jnp.transpose(x, (0, 2, 1))                 # [B, N, 3]

    # knn(): pairwise distances + top-k fused in one Pallas kernel (no [B,N,N] in HBM).
    idx2 = knn_indices(x_nlast, x, k)                     # [B, N, k] int32

    idx_base = jnp.arange(B, dtype=jnp.int32).reshape(B, 1, 1) * N
    idx = (idx2 + idx_base).reshape(-1)                   # [B*N*k]

    # get_graph_feature(): gather + relative coordinates (XLA glue), flattened
    # in the wrapper so the DGCNN kernel does no layout work beyond the K-max.
    knn_points = x_nlast.reshape(B * N, C)[idx].reshape(B, N, k, C)   # [B, N, k, 3]
    rel = knn_points - x_nlast[:, :, None, :]                          # [B, N, k, 3]
    rel_flat = rel.reshape(B, N * k, C)                                # [B, N*k, 3]

    # DGCNN (fused, N-tiled Pallas kernel) -> channels-first [B, E, N] directly.
    features = dgcnn_forward(rel_flat, params, k=k, num_points=N)
    return features, idx, knn_points, idx2


if __name__ == "__main__":
    B, N, K, EMB = 2, 16, 8, 32
    key = jax.random.PRNGKey(0)
    key, xkey = jax.random.split(key)
    x = jax.random.normal(xkey, (B, 3, N), jnp.float32)
    params = init_params(key, emb_dims=EMB)

    features, idx, knn_points, idx2 = feature_extractor_forward(x, K, params)
    jax.block_until_ready((features, idx, knn_points, idx2))

    assert features.shape == (B, EMB, N)
    assert idx.shape == (B * N * K,)
    assert knn_points.shape == (B, N, K, 3)
    assert idx2.shape == (B, N, K)
    # Sanity: indices in range, each point is its own nearest neighbor, ReLU output finite/non-negative.
    assert bool(jnp.all((idx2 >= 0) & (idx2 < N)))
    assert bool(jnp.all(idx2[:, :, 0] == jnp.arange(N, dtype=jnp.int32)[None, :]))
    assert bool(jnp.all(jnp.isfinite(features))) and bool(jnp.all(features >= 0.0))
    # TODO(synk): BatchNorm is applied with eval-mode running statistics (mean=0, var=1);
    # PyTorch's fresh module in train() mode would use batch statistics.
    # TODO(synk): indices are int32 (PyTorch topk returns int64); int64 gathers are not
    # needed on TPU for these sizes.
    # TODO(synk): bf16 matmul operands (v6e/v7x) are an easy further win; kept f32 here for
    # exact-forward-semantics parity across v5e/v6e/v7x.
    print("KERNEL_OK")
</pallas_src>

<mosaic_0001>
module attributes {stable_mosaic.version = 11 : i64} {
  func.func @_knn_kernel(%arg0: i32, %arg1: i32, %arg2: memref<1x16x3xf32, #tpu.memory_space<vmem>>, %arg3: memref<1x3x16xf32, #tpu.memory_space<vmem>>, %arg4: memref<1x16x8xi32, #tpu.memory_space<vmem>>) attributes {dimension_semantics = [#tpu.dimension_semantics<parallel>, #tpu.dimension_semantics<parallel>], iteration_bounds = array<i64: 2, 1>, scalar_prefetch = 0 : i64, scratch_operands = 0 : i64, tpu.core_type = #tpu.core_type<tc>, window_params = [{transform_indices = @transform_0, window_bounds = array<i64: 1, 16, 3>}, {transform_indices = @transform_1, window_bounds = array<i64: 1, 3, 16>}, {transform_indices = @transform_2, window_bounds = array<i64: 1, 16, 8>}]} {
    %c0 = arith.constant 0 : index
    %c0_0 = arith.constant 0 : index
    %c0_1 = arith.constant 0 : index
    %0 = vector.load %arg2[%c0, %c0_0, %c0_1] : memref<1x16x3xf32, #tpu.memory_space<vmem>>, vector<1x16x3xf32>
    %1 = vector.shape_cast %0 : vector<1x16x3xf32> to vector<16x3xf32>
    %c0_2 = arith.constant 0 : index
    %c0_3 = arith.constant 0 : index
    %c0_4 = arith.constant 0 : index
    %2 = vector.load %arg3[%c0_2, %c0_3, %c0_4] : memref<1x3x16xf32, #tpu.memory_space<vmem>>, vector<1x3x16xf32>
    %3 = vector.shape_cast %2 : vector<1x3x16xf32> to vector<3x16xf32>
    %4 = vector.extract_strided_slice %1 {offsets = [0, 0], sizes = [16, 1], strides = [1, 1]} : vector<16x3xf32> to vector<16x1xf32>
    %5 = vector.extract_strided_slice %3 {offsets = [0, 0], sizes = [1, 16], strides = [1, 1]} : vector<3x16xf32> to vector<1x16xf32>
    %6 = vector.broadcast %4 : vector<16x1xf32> to vector<16x16xf32>
    %7 = vector.broadcast %5 : vector<1x16xf32> to vector<16x16xf32>
    %8 = arith.mulf %6, %7 : vector<16x16xf32>
    %9 = vector.extract_strided_slice %1 {offsets = [0, 1], sizes = [16, 1], strides = [1, 1]} : vector<16x3xf32> to vector<16x1xf32>
    %10 = vector.extract_strided_slice %3 {offsets = [1, 0], sizes = [1, 16], strides = [1, 1]} : vector<3x16xf32> to vector<1x16xf32>
    %11 = vector.broadcast %9 : vector<16x1xf32> to vector<16x16xf32>
    %12 = vector.broadcast %10 : vector<1x16xf32> to vector<16x16xf32>
    %13 = arith.mulf %11, %12 : vector<16x16xf32>
    %14 = arith.addf %8, %13 : vector<16x16xf32>
    %15 = vector.extract_strided_slice %1 {offsets = [0, 2], sizes = [16, 1], strides = [1, 1]} : vector<16x3xf32> to vector<16x1xf32>
    %16 = vector.extract_strided_slice %3 {offsets = [2, 0], sizes = [1, 16], strides = [1, 1]} : vector<3x16xf32> to vector<1x16xf32>
    %17 = vector.broadcast %15 : vector<16x1xf32> to vector<16x16xf32>
    %18 = vector.broadcast %16 : vector<1x16xf32> to vector<16x16xf32>
    %19 = arith.mulf %17, %18 : vector<16x16xf32>
    %20 = arith.addf %14, %19 : vector<16x16xf32>
    %21 = arith.mulf %1, %1 : vector<16x3xf32>
    %cst = arith.constant dense<0.000000e+00> : vector<16xf32>
    %22 = vector.multi_reduction <add>, %21, %cst [1] : vector<16x3xf32> to vector<16xf32>
    %23 = vector.shape_cast %22 : vector<16xf32> to vector<16x1xf32>
    %24 = arith.mulf %3, %3 : vector<3x16xf32>
    %cst_5 = arith.constant dense<0.000000e+00> : vector<16xf32>
    %25 = vector.multi_reduction <add>, %24, %cst_5 [0] : vector<3x16xf32> to vector<16xf32>
    %26 = vector.shape_cast %25 : vector<16xf32> to vector<1x16xf32>
    %cst_6 = arith.constant 2.000000e+00 : f32
    %27 = vector.broadcast %cst_6 : f32 to vector<16x16xf32>
    %28 = arith.mulf %27, %20 : vector<16x16xf32>
    %29 = vector.broadcast %23 : vector<16x1xf32> to vector<16x16xf32>
    %30 = arith.subf %28, %29 : vector<16x16xf32>
    %31 = vector.broadcast %26 : vector<1x16xf32> to vector<16x16xf32>
    %32 = arith.subf %30, %31 : vector<16x16xf32>
    %33 = tpu.iota {dimensions = array<i32: 1>} : vector<16x16xi32>
    %cst_7 = arith.constant dense<0xFF800000> : vector<16xf32>
    %34 = vector.multi_reduction <maximumf>, %32, %cst_7 [1] : vector<16x16xf32> to vector<16xf32>
    %35 = vector.shape_cast %34 : vector<16xf32> to vector<16x1xf32>
    %36 = vector.broadcast %35 : vector<16x1xf32> to vector<16x16xf32>
    %37 = arith.cmpf oeq, %32, %36 : vector<16x16xf32>
    %c16_i32 = arith.constant 16 : i32
    %38 = vector.broadcast %c16_i32 : i32 to vector<16x16xi32>
    %39 = arith.select %37, %33, %38 : vector<16x16xi1>, vector<16x16xi32>
    %cst_8 = arith.constant dense<2147483647> : vector<16xi32>
    %40 = vector.multi_reduction <minsi>, %39, %cst_8 [1] : vector<16x16xi32> to vector<16xi32>
    %41 = vector.shape_cast %40 : vector<16xi32> to vector<16x1xi32>
    %42 = vector.broadcast %41 : vector<16x1xi32> to vector<16x16xi32>
    %43 = arith.cmpi eq, %33, %42 : vector<16x16xi32>
    %cst_9 = arith.constant 0xFF800000 : f32
    %44 = vector.broadcast %cst_9 : f32 to vector<16x16xf32>
    %45 = arith.select %43, %44, %32 : vector<16x16xi1>, vector<16x16xf32>
    %cst_10 = arith.constant dense<0xFF800000> : vector<16xf32>
    %46 = vector.multi_reduction <maximumf>, %45, %cst_10 [1] : vector<16x16xf32> to vector<16xf32>
    %47 = vector.shape_cast %46 : vector<16xf32> to vector<16x1xf32>
    %48 = vector.broadcast %47 : vector<16x1xf32> to vector<16x16xf32>
    %49 = arith.cmpf oeq, %45, %48 : vector<16x16xf32>
    %c16_i32_11 = arith.constant 16 : i32
    %50 = vector.broadcast %c16_i32_11 : i32 to vector<16x16xi32>
    %51 = arith.select %49, %33, %50 : vector<16x16xi1>, vector<16x16xi32>
    %cst_12 = arith.constant dense<2147483647> : vector<16xi32>
    %52 = vector.multi_reduction <minsi>, %51, %cst_12 [1] : vector<16x16xi32> to vector<16xi32>
    %53 = vector.shape_cast %52 : vector<16xi32> to vector<16x1xi32>
    %54 = vector.broadcast %53 : vector<16x1xi32> to vector<16x16xi32>
    %55 = arith.cmpi eq, %33, %54 : vector<16x16xi32>
    %cst_13 = arith.constant 0xFF800000 : f32
    %56 = vector.broadcast %cst_13 : f32 to vector<16x16xf32>
    %57 = arith.select %55, %56, %45 : vector<16x16xi1>, vector<16x16xf32>
    %cst_14 = arith.constant dense<0xFF800000> : vector<16xf32>
    %58 = vector.multi_reduction <maximumf>, %57, %cst_14 [1] : vector<16x16xf32> to vector<16xf32>
    %59 = vector.shape_cast %58 : vector<16xf32> to vector<16x1xf32>
    %60 = vector.broadcast %59 : vector<16x1xf32> to vector<16x16xf32>
    %61 = arith.cmpf oeq, %57, %60 : vector<16x16xf32>
    %c16_i32_15 = arith.constant 16 : i32
    %62 = vector.broadcast %c16_i32_15 : i32 to vector<16x16xi32>
    %63 = arith.select %61, %33, %62 : vector<16x16xi1>, vector<16x16xi32>
    %cst_16 = arith.constant dense<2147483647> : vector<16xi32>
    %64 = vector.multi_reduction <minsi>, %63, %cst_16 [1] : vector<16x16xi32> to vector<16xi32>
    %65 = vector.shape_cast %64 : vector<16xi32> to vector<16x1xi32>
    %66 = vector.broadcast %65 : vector<16x1xi32> to vector<16x16xi32>
    %67 = arith.cmpi eq, %33, %66 : vector<16x16xi32>
    %cst_17 = arith.constant 0xFF800000 : f32
    %68 = vector.broadcast %cst_17 : f32 to vector<16x16xf32>
    %69 = arith.select %67, %68, %57 : vector<16x16xi1>, vector<16x16xf32>
    %cst_18 = arith.constant dense<0xFF800000> : vector<16xf32>
    %70 = vector.multi_reduction <maximumf>, %69, %cst_18 [1] : vector<16x16xf32> to vector<16xf32>
    %71 = vector.shape_cast %70 : vector<16xf32> to vector<16x1xf32>
    %72 = vector.broadcast %71 : vector<16x1xf32> to vector<16x16xf32>
    %73 = arith.cmpf oeq, %69, %72 : vector<16x16xf32>
    %c16_i32_19 = arith.constant 16 : i32
    %74 = vector.broadcast %c16_i32_19 : i32 to vector<16x16xi32>
    %75 = arith.select %73, %33, %74 : vector<16x16xi1>, vector<16x16xi32>
    %cst_20 = arith.constant dense<2147483647> : vector<16xi32>
    %76 = vector.multi_reduction <minsi>, %75, %cst_20 [1] : vector<16x16xi32> to vector<16xi32>
    %77 = vector.shape_cast %76 : vector<16xi32> to vector<16x1xi32>
    %78 = vector.broadcast %77 : vector<16x1xi32> to vector<16x16xi32>
    %79 = arith.cmpi eq, %33, %78 : vector<16x16xi32>
    %cst_21 = arith.constant 0xFF800000 : f32
    %80 = vector.broadcast %cst_21 : f32 to vector<16x16xf32>
    %81 = arith.select %79, %80, %69 : vector<16x16xi1>, vector<16x16xf32>
    %cst_22 = arith.constant dense<0xFF800000> : vector<16xf32>
    %82 = vector.multi_reduction <maximumf>, %81, %cst_22 [1] : vector<16x16xf32> to vector<16xf32>
    %83 = vector.shape_cast %82 : vector<16xf32> to vector<16x1xf32>
    %84 = vector.broadcast %83 : vector<16x1xf32> to vector<16x16xf32>
    %85 = arith.cmpf oeq, %81, %84 : vector<16x16xf32>
    %c16_i32_23 = arith.constant 16 : i32
    %86 = vector.broadcast %c16_i32_23 : i32 to vector<16x16xi32>
    %87 = arith.select %85, %33, %86 : vector<16x16xi1>, vector<16x16xi32>
    %cst_24 = arith.constant dense<2147483647> : vector<16xi32>
    %88 = vector.multi_reduction <minsi>, %87, %cst_24 [1] : vector<16x16xi32> to vector<16xi32>
    %89 = vector.shape_cast %88 : vector<16xi32> to vector<16x1xi32>
    %90 = vector.broadcast %89 : vector<16x1xi32> to vector<16x16xi32>
    %91 = arith.cmpi eq, %33, %90 : vector<16x16xi32>
    %cst_25 = arith.constant 0xFF800000 : f32
    %92 = vector.broadcast %cst_25 : f32 to vector<16x16xf32>
    %93 = arith.select %91, %92, %81 : vector<16x16xi1>, vector<16x16xf32>
    %cst_26 = arith.constant dense<0xFF800000> : vector<16xf32>
    %94 = vector.multi_reduction <maximumf>, %93, %cst_26 [1] : vector<16x16xf32> to vector<16xf32>
    %95 = vector.shape_cast %94 : vector<16xf32> to vector<16x1xf32>
    %96 = vector.broadcast %95 : vector<16x1xf32> to vector<16x16xf32>
    %97 = arith.cmpf oeq, %93, %96 : vector<16x16xf32>
    %c16_i32_27 = arith.constant 16 : i32
    %98 = vector.broadcast %c16_i32_27 : i32 to vector<16x16xi32>
    %99 = arith.select %97, %33, %98 : vector<16x16xi1>, vector<16x16xi32>
    %cst_28 = arith.constant dense<2147483647> : vector<16xi32>
    %100 = vector.multi_reduction <minsi>, %99, %cst_28 [1] : vector<16x16xi32> to vector<16xi32>
    %101 = vector.shape_cast %100 : vector<16xi32> to vector<16x1xi32>
    %102 = vector.broadcast %101 : vector<16x1xi32> to vector<16x16xi32>
    %103 = arith.cmpi eq, %33, %102 : vector<16x16xi32>
    %cst_29 = arith.constant 0xFF800000 : f32
    %104 = vector.broadcast %cst_29 : f32 to vector<16x16xf32>
    %105 = arith.select %103, %104, %93 : vector<16x16xi1>, vector<16x16xf32>
    %cst_30 = arith.constant dense<0xFF800000> : vector<16xf32>
    %106 = vector.multi_reduction <maximumf>, %105, %cst_30 [1] : vector<16x16xf32> to vector<16xf32>
    %107 = vector.shape_cast %106 : vector<16xf32> to vector<16x1xf32>
    %108 = vector.broadcast %107 : vector<16x1xf32> to vector<16x16xf32>
    %109 = arith.cmpf oeq, %105, %108 : vector<16x16xf32>
    %c16_i32_31 = arith.constant 16 : i32
    %110 = vector.broadcast %c16_i32_31 : i32 to vector<16x16xi32>
    %111 = arith.select %109, %33, %110 : vector<16x16xi1>, vector<16x16xi32>
    %cst_32 = arith.constant dense<2147483647> : vector<16xi32>
    %112 = vector.multi_reduction <minsi>, %111, %cst_32 [1] : vector<16x16xi32> to vector<16xi32>
    %113 = vector.shape_cast %112 : vector<16xi32> to vector<16x1xi32>
    %114 = vector.broadcast %113 : vector<16x1xi32> to vector<16x16xi32>
    %115 = arith.cmpi eq, %33, %114 : vector<16x16xi32>
    %cst_33 = arith.constant 0xFF800000 : f32
    %116 = vector.broadcast %cst_33 : f32 to vector<16x16xf32>
    %117 = arith.select %115, %116, %105 : vector<16x16xi1>, vector<16x16xf32>
    %cst_34 = arith.constant dense<0xFF800000> : vector<16xf32>
    %118 = vector.multi_reduction <maximumf>, %117, %cst_34 [1] : vector<16x16xf32> to vector<16xf32>
    %119 = vector.shape_cast %118 : vector<16xf32> to vector<16x1xf32>
    %120 = vector.broadcast %119 : vector<16x1xf32> to vector<16x16xf32>
    %121 = arith.cmpf oeq, %117, %120 : vector<16x16xf32>
    %c16_i32_35 = arith.constant 16 : i32
    %122 = vector.broadcast %c16_i32_35 : i32 to vector<16x16xi32>
    %123 = arith.select %121, %33, %122 : vector<16x16xi1>, vector<16x16xi32>
    %cst_36 = arith.constant dense<2147483647> : vector<16xi32>
    %124 = vector.multi_reduction <minsi>, %123, %cst_36 [1] : vector<16x16xi32> to vector<16xi32>
    %125 = vector.shape_cast %124 : vector<16xi32> to vector<16x1xi32>
    %126 = tpu.concatenate %41, %53, %65, %77, %89, %101, %113, %125 in 1 : vector<16x1xi32>, vector<16x1xi32>, vector<16x1xi32>, vector<16x1xi32>, vector<16x1xi32>, vector<16x1xi32>, vector<16x1xi32>, vector<16x1xi32> -> vector<16x8xi32>
    %c0_37 = arith.constant 0 : index
    %c0_38 = arith.constant 0 : index
    %c0_39 = arith.constant 0 : index
    %127 = vector.load %arg4[%c0_37, %c0_38, %c0_39] : memref<1x16x8xi32, #tpu.memory_space<vmem>>, vector<1x16x8xi32>
    %128 = vector.shape_cast %127 : vector<1x16x8xi32> to vector<16x8xi32>
    %129 = vector.shape_cast %126 : vector<16x8xi32> to vector<1x16x8xi32>
    tpu.vector_store %arg4[%c0_37, %c0_38, %c0_39], %129 {strides = array<i32>} : memref<1x16x8xi32, #tpu.memory_space<vmem>>, vector<1x16x8xi32>,
    return
  }
  func.func @transform_0(%arg0: i32, %arg1: i32) -> (i32, i32, i32) {
    %c0_i32 = arith.constant 0 : i32
    %c0_i32_0 = arith.constant 0 : i32
    return %arg0, %arg1, %c0_i32 : i32, i32, i32
  }
  func.func @transform_1(%arg0: i32, %arg1: i32) -> (i32, i32, i32) {
    %c0_i32 = arith.constant 0 : i32
    %c0_i32_0 = arith.constant 0 : i32
    %c0_i32_1 = arith.constant 0 : i32
    return %arg0, %c0_i32, %c0_i32_0 : i32, i32, i32
  }
  func.func @transform_2(%arg0: i32, %arg1: i32) -> (i32, i32, i32) {
    %c0_i32 = arith.constant 0 : i32
    %c0_i32_0 = arith.constant 0 : i32
    return %arg0, %arg1, %c0_i32 : i32, i32, i32
  }
}

module attributes {stable_mosaic.version = 11 : i64} {
  func.func @_dgcnn_kernel(%arg0: i32, %arg1: i32, %arg2: memref<1x128x3xf32, #tpu.memory_space<vmem>>, %arg3: memref<3x32xf32, #tpu.memory_space<vmem>>, %arg4: memref<1x32xf32, #tpu.memory_space<vmem>>, %arg5: memref<32x32xf32, #tpu.memory_space<vmem>>, %arg6: memref<1x32xf32, #tpu.memory_space<vmem>>, %arg7: memref<32x64xf32, #tpu.memory_space<vmem>>, %arg8: memref<1x64xf32, #tpu.memory_space<vmem>>, %arg9: memref<64x128xf32, #tpu.memory_space<vmem>>, %arg10: memref<1x128xf32, #tpu.memory_space<vmem>>, %arg11: memref<32x256xf32, #tpu.memory_space<vmem>>, %arg12: memref<32x1xf32, #tpu.memory_space<vmem>>, %arg13: memref<1x32x16xf32, #tpu.memory_space<vmem>>) attributes {dimension_semantics = [#tpu.dimension_semantics<parallel>, #tpu.dimension_semantics<parallel>], iteration_bounds = array<i64: 2, 1>, scalar_prefetch = 0 : i64, scratch_operands = 0 : i64, tpu.core_type = #tpu.core_type<tc>, window_params = [{transform_indices = @transform_0, window_bounds = array<i64: 1, 128, 3>}, {pipeline_mode = #tpu.pipeline_mode<synchronous>, transform_indices = @transform_1, window_bounds = array<i64: 3, 32>}, {pipeline_mode = #tpu.pipeline_mode<synchronous>, transform_indices = @transform_2, window_bounds = array<i64: 1, 32>}, {pipeline_mode = #tpu.pipeline_mode<synchronous>, transform_indices = @transform_3, window_bounds = array<i64: 32, 32>}, {pipeline_mode = #tpu.pipeline_mode<synchronous>, transform_indices = @transform_4, window_bounds = array<i64: 1, 32>}, {pipeline_mode = #tpu.pipeline_mode<synchronous>, transform_indices = @transform_5, window_bounds = array<i64: 32, 64>}, {pipeline_mode = #tpu.pipeline_mode<synchronous>, transform_indices = @transform_6, window_bounds = array<i64: 1, 64>}, {pipeline_mode = #tpu.pipeline_mode<synchronous>, transform_indices = @transform_7, window_bounds = array<i64: 64, 128>}, {pipeline_mode = #tpu.pipeline_mode<synchronous>, transform_indices = @transform_8, window_bounds = array<i64: 1, 128>}, {pipeline_mode = #tpu.pipeline_mode<synchronous>, transform_indices = @transform_9, window_bounds = array<i64: 32, 256>}, {pipeline_mode = #tpu.pipeline_mode<synchronous>, transform_indices = @transform_10, window_bounds = array<i64: 32, 1>}, {transform_indices = @transform_11, window_bounds = array<i64: 1, 32, 16>}]} {
    %c0 = arith.constant 0 : index
    %c0_0 = arith.constant 0 : index
    %c0_1 = arith.constant 0 : index
    %0 = vector.load %arg2[%c0, %c0_0, %c0_1] : memref<1x128x3xf32, #tpu.memory_space<vmem>>, vector<1x128x3xf32>
    %1 = vector.shape_cast %0 : vector<1x128x3xf32> to vector<128x3xf32>
    %c0_2 = arith.constant 0 : index
    %c0_3 = arith.constant 0 : index
    %2 = vector.load %arg3[%c0_2, %c0_3] : memref<3x32xf32, #tpu.memory_space<vmem>>, vector<3x32xf32>
    %3 = vector.extract_strided_slice %1 {offsets = [0, 0], sizes = [128, 1], strides = [1, 1]} : vector<128x3xf32> to vector<128x1xf32>
    %4 = vector.extract_strided_slice %2 {offsets = [0, 0], sizes = [1, 32], strides = [1, 1]} : vector<3x32xf32> to vector<1x32xf32>
    %5 = vector.broadcast %3 : vector<128x1xf32> to vector<128x32xf32>
    %6 = vector.broadcast %4 : vector<1x32xf32> to vector<128x32xf32>
    %7 = arith.mulf %5, %6 : vector<128x32xf32>
    %8 = vector.extract_strided_slice %1 {offsets = [0, 1], sizes = [128, 1], strides = [1, 1]} : vector<128x3xf32> to vector<128x1xf32>
    %9 = vector.extract_strided_slice %2 {offsets = [1, 0], sizes = [1, 32], strides = [1, 1]} : vector<3x32xf32> to vector<1x32xf32>
    %10 = vector.broadcast %8 : vector<128x1xf32> to vector<128x32xf32>
    %11 = vector.broadcast %9 : vector<1x32xf32> to vector<128x32xf32>
    %12 = arith.mulf %10, %11 : vector<128x32xf32>
    %13 = arith.addf %7, %12 : vector<128x32xf32>
    %14 = vector.extract_strided_slice %1 {offsets = [0, 2], sizes = [128, 1], strides = [1, 1]} : vector<128x3xf32> to vector<128x1xf32>
    %15 = vector.extract_strided_slice %2 {offsets = [2, 0], sizes = [1, 32], strides = [1, 1]} : vector<3x32xf32> to vector<1x32xf32>
    %16 = vector.broadcast %14 : vector<128x1xf32> to vector<128x32xf32>
    %17 = vector.broadcast %15 : vector<1x32xf32> to vector<128x32xf32>
    %18 = arith.mulf %16, %17 : vector<128x32xf32>
    %19 = arith.addf %13, %18 : vector<128x32xf32>
    %c0_4 = arith.constant 0 : index
    %c0_5 = arith.constant 0 : index
    %20 = vector.load %arg4[%c0_4, %c0_5] : memref<1x32xf32, #tpu.memory_space<vmem>>, vector<1x32xf32>
    %21 = vector.broadcast %20 : vector<1x32xf32> to vector<128x32xf32>
    %22 = arith.addf %19, %21 : vector<128x32xf32>
    %cst = arith.constant 0.000000e+00 : f32
    %23 = vector.broadcast %cst : f32 to vector<128x32xf32>
    %24 = arith.maximumf %22, %23 : vector<128x32xf32>
    %25 = vector.shape_cast %24 : vector<128x32xf32> to vector<16x8x32xf32>
    %cst_6 = arith.constant dense<0xFF800000> : vector<16x32xf32>
    %26 = vector.multi_reduction <maximumf>, %25, %cst_6 [1] : vector<16x8x32xf32> to vector<16x32xf32>
    %c0_7 = arith.constant 0 : index
    %c0_8 = arith.constant 0 : index
    %27 = vector.load %arg5[%c0_7, %c0_8] : memref<32x32xf32, #tpu.memory_space<vmem>>, vector<32x32xf32>
    %cst_9 = arith.constant dense<0.000000e+00> : vector<128x32xf32>
    %28 = tpu.matmul %24, %27, %cst_9 {dimension_numbers = #tpu.dot_dimension_numbers<[1], [0], [0], [1], [0, 0, 1, 1], [], []>} : vector<128x32xf32>, vector<32x32xf32>, vector<128x32xf32> -> vector<128x32xf32>
    %c0_10 = arith.constant 0 : index
    %c0_11 = arith.constant 0 : index
    %29 = vector.load %arg6[%c0_10, %c0_11] : memref<1x32xf32, #tpu.memory_space<vmem>>, vector<1x32xf32>
    %30 = vector.broadcast %29 : vector<1x32xf32> to vector<128x32xf32>
    %31 = arith.addf %28, %30 : vector<128x32xf32>
    %cst_12 = arith.constant 0.000000e+00 : f32
    %32 = vector.broadcast %cst_12 : f32 to vector<128x32xf32>
    %33 = arith.maximumf %31, %32 : vector<128x32xf32>
    %34 = vector.shape_cast %33 : vector<128x32xf32> to vector<16x8x32xf32>
    %cst_13 = arith.constant dense<0xFF800000> : vector<16x32xf32>
    %35 = vector.multi_reduction <maximumf>, %34, %cst_13 [1] : vector<16x8x32xf32> to vector<16x32xf32>
    %c0_14 = arith.constant 0 : index
    %c0_15 = arith.constant 0 : index
    %36 = vector.load %arg7[%c0_14, %c0_15] : memref<32x64xf32, #tpu.memory_space<vmem>>, vector<32x64xf32>
    %cst_16 = arith.constant dense<0.000000e+00> : vector<128x64xf32>
    %37 = tpu.matmul %33, %36, %cst_16 {dimension_numbers = #tpu.dot_dimension_numbers<[1], [0], [0], [1], [0, 0, 1, 1], [], []>} : vector<128x32xf32>, vector<32x64xf32>, vector<128x64xf32> -> vector<128x64xf32>
    %c0_17 = arith.constant 0 : index
    %c0_18 = arith.constant 0 : index
    %38 = vector.load %arg8[%c0_17, %c0_18] : memref<1x64xf32, #tpu.memory_space<vmem>>, vector<1x64xf32>
    %39 = vector.broadcast %38 : vector<1x64xf32> to vector<128x64xf32>
    %40 = arith.addf %37, %39 : vector<128x64xf32>
    %cst_19 = arith.constant 0.000000e+00 : f32
    %41 = vector.broadcast %cst_19 : f32 to vector<128x64xf32>
    %42 = arith.maximumf %40, %41 : vector<128x64xf32>
    %43 = vector.shape_cast %42 : vector<128x64xf32> to vector<16x8x64xf32>
    %cst_20 = arith.constant dense<0xFF800000> : vector<16x64xf32>
    %44 = vector.multi_reduction <maximumf>, %43, %cst_20 [1] : vector<16x8x64xf32> to vector<16x64xf32>
    %c0_21 = arith.constant 0 : index
    %c0_22 = arith.constant 0 : index
    %45 = vector.load %arg9[%c0_21, %c0_22] : memref<64x128xf32, #tpu.memory_space<vmem>>, vector<64x128xf32>
    %cst_23 = arith.constant dense<0.000000e+00> : vector<128x128xf32>
    %46 = tpu.matmul %42, %45, %cst_23 {dimension_numbers = #tpu.dot_dimension_numbers<[1], [0], [0], [1], [0, 0, 1, 1], [], []>} : vector<128x64xf32>, vector<64x128xf32>, vector<128x128xf32> -> vector<128x128xf32>
    %c0_24 = arith.constant 0 : index
    %c0_25 = arith.constant 0 : index
    %47 = vector.load %arg10[%c0_24, %c0_25] : memref<1x128xf32, #tpu.memory_space<vmem>>, vector<1x128xf32>
    %48 = vector.broadcast %47 : vector<1x128xf32> to vector<128x128xf32>
    %49 = arith.addf %46, %48 : vector<128x128xf32>
    %cst_26 = arith.constant 0.000000e+00 : f32
    %50 = vector.broadcast %cst_26 : f32 to vector<128x128xf32>
    %51 = arith.maximumf %49, %50 : vector<128x128xf32>
    %52 = vector.shape_cast %51 : vector<128x128xf32> to vector<16x8x128xf32>
    %cst_27 = arith.constant dense<0xFF800000> : vector<16x128xf32>
    %53 = vector.multi_reduction <maximumf>, %52, %cst_27 [1] : vector<16x8x128xf32> to vector<16x128xf32>
    %54 = tpu.concatenate %26, %35, %44, %53 in 1 : vector<16x32xf32>, vector<16x32xf32>, vector<16x64xf32>, vector<16x128xf32> -> vector<16x256xf32>
    %c0_28 = arith.constant 0 : index
    %c0_29 = arith.constant 0 : index
    %55 = vector.load %arg11[%c0_28, %c0_29] : memref<32x256xf32, #tpu.memory_space<vmem>>, vector<32x256xf32>
    %cst_30 = arith.constant dense<0.000000e+00> : vector<32x16xf32>
    %56 = tpu.matmul %55, %54, %cst_30 {dimension_numbers = #tpu.dot_dimension_numbers<[1], [1], [0], [0], [0, 0, 1, 0], [], []>} : vector<32x256xf32>, vector<16x256xf32>, vector<32x16xf32> -> vector<32x16xf32>
    %c0_31 = arith.constant 0 : index
    %c0_32 = arith.constant 0 : index
    %57 = vector.load %arg12[%c0_31, %c0_32] : memref<32x1xf32, #tpu.memory_space<vmem>>, vector<32x1xf32>
    %58 = vector.broadcast %57 : vector<32x1xf32> to vector<32x16xf32>
    %59 = arith.addf %56, %58 : vector<32x16xf32>
    %cst_33 = arith.constant 0.000000e+00 : f32
    %60 = vector.broadcast %cst_33 : f32 to vector<32x16xf32>
    %61 = arith.maximumf %59, %60 : vector<32x16xf32>
    %c0_34 = arith.constant 0 : index
    %c0_35 = arith.constant 0 : index
    %c0_36 = arith.constant 0 : index
    %62 = vector.load %arg13[%c0_34, %c0_35, %c0_36] : memref<1x32x16xf32, #tpu.memory_space<vmem>>, vector<1x32x16xf32>
    %63 = vector.shape_cast %62 : vector<1x32x16xf32> to vector<32x16xf32>
    %64 = vector.shape_cast %61 : vector<32x16xf32> to vector<1x32x16xf32>
    tpu.vector_store %arg13[%c0_34, %c0_35, %c0_36], %64 {strides = array<i32>} : memref<1x32x16xf32, #tpu.memory_space<vmem>>, vector<1x32x16xf32>,
    return
  }
  func.func @transform_0(%arg0: i32, %arg1: i32) -> (i32, i32, i32) {
    %c0_i32 = arith.constant 0 : i32
    %c0_i32_0 = arith.constant 0 : i32
    return %arg0, %arg1, %c0_i32 : i32, i32, i32
  }
  func.func @transform_1(%arg0: i32, %arg1: i32) -> (i32, i32) {
    %c0_i32 = arith.constant 0 : i32
    %c0_i32_0 = arith.constant 0 : i32
    %c0_i32_1 = arith.constant 0 : i32
    return %c0_i32, %c0_i32_0 : i32, i32
  }
  func.func @transform_2(%arg0: i32, %arg1: i32) -> (i32, i32) {
    %c0_i32 = arith.constant 0 : i32
    %c0_i32_0 = arith.constant 0 : i32
    %c0_i32_1 = arith.constant 0 : i32
    return %c0_i32, %c0_i32_0 : i32, i32
  }
  func.func @transform_3(%arg0: i32, %arg1: i32) -> (i32, i32) {
    %c0_i32 = arith.constant 0 : i32
    %c0_i32_0 = arith.constant 0 : i32
    %c0_i32_1 = arith.constant 0 : i32
    return %c0_i32, %c0_i32_0 : i32, i32
  }
  func.func @transform_4(%arg0: i32, %arg1: i32) -> (i32, i32) {
    %c0_i32 = arith.constant 0 : i32
    %c0_i32_0 = arith.constant 0 : i32
    %c0_i32_1 = arith.constant 0 : i32
    return %c0_i32, %c0_i32_0 : i32, i32
  }
  func.func @transform_5(%arg0: i32, %arg1: i32) -> (i32, i32) {
    %c0_i32 = arith.constant 0 : i32
    %c0_i32_0 = arith.constant 0 : i32
    %c0_i32_1 = arith.constant 0 : i32
    return %c0_i32, %c0_i32_0 : i32, i32
  }
  func.func @transform_6(%arg0: i32, %arg1: i32) -> (i32, i32) {
    %c0_i32 = arith.constant 0 : i32
    %c0_i32_0 = arith.constant 0 : i32
    %c0_i32_1 = arith.constant 0 : i32
    return %c0_i32, %c0_i32_0 : i32, i32
  }
  func.func @transform_7(%arg0: i32, %arg1: i32) -> (i32, i32) {
    %c0_i32 = arith.constant 0 : i32
    %c0_i32_0 = arith.constant 0 : i32
    %c0_i32_1 = arith.constant 0 : i32
    return %c0_i32, %c0_i32_0 : i32, i32
  }
  func.func @transform_8(%arg0: i32, %arg1: i32) -> (i32, i32) {
    %c0_i32 = arith.constant 0 : i32
    %c0_i32_0 = arith.constant 0 : i32
    %c0_i32_1 = arith.constant 0 : i32
    return %c0_i32, %c0_i32_0 : i32, i32
  }
  func.func @transform_9(%arg0: i32, %arg1: i32) -> (i32, i32) {
    %c0_i32 = arith.constant 0 : i32
    %c0_i32_0 = arith.constant 0 : i32
    %c0_i32_1 = arith.constant 0 : i32
    return %c0_i32, %c0_i32_0 : i32, i32
  }
  func.func @transform_10(%arg0: i32, %arg1: i32) -> (i32, i32) {
    %c0_i32 = arith.constant 0 : i32
    %c0_i32_0 = arith.constant 0 : i32
    %c0_i32_1 = arith.constant 0 : i32
    return %c0_i32, %c0_i32_0 : i32, i32
  }
  func.func @transform_11(%arg0: i32, %arg1: i32) -> (i32, i32, i32) {
    %c0_i32 = arith.constant 0 : i32
    %c0_i32_0 = arith.constant 0 : i32
    return %arg0, %c0_i32, %arg1 : i32, i32, i32
  }
}

</mosaic_0001>

<bundles_post_ra>
// kernel: feature_extractor_forward.2
= control target key start
LH: loop header
LB: loop body
LE: loop exit
PB: predicated region body
PF: predicated region fallthrough
CT: control target
= control target key end

     0   :  { %s835_s9 = smov 0   ;;  %s837_s10 = smov 0   ;;  %s955_s0 = inlined_call_operand.vmem [shape: f32[2,16,3], index: 0, kind: input, shape index: {}]   ;;  %s956_s1 = inlined_call_operand.vmem [shape: f32[2,3,16], index: 1, kind: input, shape index: {}]   ;;  %s957_s2 = inlined_call_operand.vmem [shape: s32[2,16,8], index: 2, kind: output, shape index: {}]  }
   0x1   :  { %s839_s11 = smov 0  }
   0x2 LB: > { %s24_s12 = sadd.s32 1, %s811_s10  ;;  %p752_p0 = scmp.ge.s32.totalorder %s815_s11, 1  ;;  %s815_s11 = sphi %s839_s11, %s12_s11   ;;  %s811_s10 = sphi %s837_s10, %s959_s10   ;;  %s807_s9 = sphi %s835_s9, %s958_s9  }
   0x3   : > { %p26_p1 = scmp.ge.s32.totalorder %s24_s12, 2  ;;  %p142_p2 = scmp.lt.s32.totalorder %s815_s11, 3 }
   0x5   : > { %s961_s12 = smov (%p26_p1, %s24_s12), 0  ;;  %p143_p3 = pnand %p752_p0, %p142_p2 }
   0x6   : > { %p177_p4 = scmp.lt.s32.totalorder (!%p143_p3), %s807_s9, 1 }
   0x7   : > { %146 = sbr.rel (%p143_p3) target bundleno = 3651 (0xe43), region = 28 }
   0xc   : > { %v817_v0 = vmov 1   ;;  %v818_v1 = vmov 0   ;;  %s963_s9 = smov (!%p177_p4, %s807_s9), 1  ;;  %v819_v4 = vmov 2   ;;  %vm253_vm0 = vcmask 23552  }
   0xd   : > { %790 = vset.pattern.permute.xlu1 %v817_v0  ;;  %789 = vset.pattern.permute.xlu0 %v818_v1  ;;  %s760_s13 = sshll.u32 %s963_s9, 4  ;;  %s755_s17 = sshll.u32 %s963_s9, 2  ;;  %vm261_vm1 = vcmask 124928   ;;  %v213_v11 = vlaneseq  ;;  %vm277_vm2 = vcmask 130048  }
   0xe   : > { %s184_s16 = scalar_lea.vmem %s955_s0, %s760_s13  ;;  %s189_s20 = scalar_lea.vmem %s956_s1, %s755_s17 }
   0xf   : > { %v200_v2 = vld [vmem:[%s184_s16] sm:$0xff]  ;;  %v201_v3 = vld [vmem:[%s184_s16 + $0x8] sm:$0xff]  ;;  %v214_v13 = vshrl.u32 %v213_v11, 7  ;;  %v869_v52 = vand.u32 127, %v213_v11  ;;  %s198_s23 = scalar_lea.vmem %s957_s2, %s760_s13 }
  0x10   : > { %220 = vperm.xlu1 %790, %v200_v2   ;;  %205 = vperm.xlu0 %789, %v200_v2   ;;  %v251_v5 = vmul.f32 %v200_v2, %v200_v2  ;;  %v252_v7 = vmul.f32 %v201_v3, %v201_v3  ;;  %v202_v9 = vld [vmem:[%s189_s20] sm:$0x7] }
  0x11   : > { %v260_v10 = vmul.f32 %v202_v9, %v202_v9  ;;  %v229_v17 = vsub.s32 1, %v214_v13  ;;  %v215_v18 = vsub.s32 0, %v214_v13  ;;  %v245_v24 = vsub.s32 2, %v214_v13 }
  0x12   : > { %v254_v6 = vsel %vm253_vm0, %v251_v5, 0.0  ;;  %v257_v8 = vsel %vm253_vm0, %v252_v7, 0.0 }
  0x13   : > { %v262_v12 = vsel %vm261_vm1, %v260_v10, 0.0  ;;  %v230_v21 = vrot.slane %v202_v9, %v229_v17  ;;  %v216_v22 = vrot.slane %v202_v9, %v215_v18  ;;  %v246_v30 = vrot.slane %v202_v9, %v245_v24 }
  0x14   : > { %224 = vperm.xlu1 %790, %v201_v3   ;;  %210 = vperm.xlu0 %789, %v201_v3   ;;  %v263_v14 = vrot.slane %v262_v12, 4 }
  0x16   : > { %v264_v19 = vadd.f32 %v263_v14, %v262_v12 }
  0x18   : > { %791 = vset.pattern.permute.xlu0 %v819_v4  ;;  %792 = vset.pattern.permute.xlu1 %v819_v4  ;;  %v265_v25 = vrot.slane %v264_v19, 2 }
  0x1a   : > { %v266_v31 = vadd.f32 %v265_v25, %v264_v19 }
  0x1c   : > { %v267_v38 = vrot.slane %v266_v31, 1 }
  0x1e   : > { %v268_v44 = vadd.f32 %v267_v38, %v266_v31 }
  0x33   : > { %255 = vadd.xlane.f32.xlu0 %v254_v6 }
  0x38   : > { %258 = vadd.xlane.f32.xlu1 %v257_v8 }
  0x49   : > { %236 = vperm.xlu0 %791, %v200_v2   ;;  %240 = vperm.xlu1 %792, %v201_v3  }
  0x8b   : > { %v206_v15 = vpop.permute.xlu0 %205  ;;  %v221_v16 = vpop.permute.xlu1 %220 }
  0x8c   : > { %v231_v27 = vmul.f32 %v230_v21, %v221_v16  ;;  %v217_v28 = vmul.f32 %v216_v22, %v206_v15 }
  0x8e   : > { %v233_v35 = vadd.f32 %v231_v27, %v217_v28 }
  0x8f   : > { %v211_v20 = vpop.permute.xlu0 %210  ;;  %v225_v23 = vpop.permute.xlu1 %224 }
  0x90   : > { %v232_v32 = vmul.f32 %v230_v21, %v225_v23  ;;  %v218_v33 = vmul.f32 %v216_v22, %v211_v20 }
  0x92   : > { %v234_v39 = vadd.f32 %v232_v32, %v218_v33 }
  0xbc   : > { %v256_v26 = vpop.xlane.xlu0 %255 }
  0xc1   : > { %v259_v29 = vpop.xlane.xlu1 %258 }
  0xc4   : > { %v237_v34 = vpop.permute.xlu0 %236 }
  0xc5   : > { %v247_v36 = vmul.f32 %v246_v30, %v237_v34  ;;  %v241_v37 = vpop.permute.xlu1 %240 }
  0xc6   : > { %v248_v40 = vmul.f32 %v246_v30, %v241_v37 }
  0xc7   : > { %v249_v41 = vadd.f32 %v247_v36, %v233_v35 }
  0xc8   : > { %v250_v42 = vadd.f32 %v248_v40, %v234_v39 }
  0xc9   : > { %v269_v43 = vmul.f32 2.0, %v249_v41 }
  0xca   : > { %v270_v45 = vmul.f32 2.0, %v250_v42 }
  0xcb   : > { %v271_v46 = vsub.f32 %v269_v43, %v256_v26 }
  0xcc   : > { %v272_v47 = vsub.f32 %v270_v45, %v259_v29 }
  0xcd   : > { %v273_v48 = vsub.f32 %v271_v46, %v268_v44 }
  0xce   : > { %v274_v49 = vsub.f32 %v272_v47, %v268_v44 }
  0xcf   : > { %v278_v50 = vsel %vm277_vm2, %v273_v48, -inf }
  0xd0   : > { %279 = vmax.xlane.f32.xlu1 %v278_v50  ;;  %v281_v51 = vsel %vm277_vm2, %v274_v49, -inf }
  0xd1   : > { %282 = vmax.xlane.f32.xlu0 %v281_v51 }
 0x159   : > { %v280_v53 = vpop.xlane.xlu1 %279 }
 0x15a   : > { %vm284_vm3 = vcmp.eq.f32.partialorder %v273_v48, %v280_v53  ;;  %v283_v54 = vpop.xlane.xlu0 %282 }
 0x15b   : > { %v286_v55 = vsel %vm284_vm3, %v869_v52, 16  ;;  %vm285_vm4 = vcmp.eq.f32.partialorder %v274_v49, %v283_v54 }
 0x15c   : > { %v288_v56 = vsel %vm277_vm2, %v286_v55, 2147483647  ;;  %v287_v57 = vsel %vm285_vm4, %v869_v52, 16 }
 0x15d   : > { %v303_v58 = vsel %vm277_vm2, %v287_v57, 2147483647  ;;  %v290_v59 = vshra.s32 %v288_v56, 16  ;;  %v289_v63 = vand.u32 65535, %v288_v56 }
 0x15e   : > { %v305_v61 = vshra.s32 %v303_v58, 16  ;;  %v304_v2 = vand.u32 65535, %v303_v58 }
 0x15f   : > { %v292_v60 = vcvt.s32.f32 %v290_v59  ;;  %v291_v1 = vcvt.s32.f32 %v289_v63 }
 0x160   : > { %v307_v62 = vcvt.s32.f32 %v305_v61  ;;  %v306_v5 = vcvt.s32.f32 %v304_v2 }
 0x161   : > { %293 = vmin.xlane.f32.xlu1 %v292_v60 }
 0x165   : > { %308 = vmin.xlane.f32.xlu1 %v307_v62 }
 0x1ea   : > { %v294_v0 = vpop.xlane.xlu1 %293 }
 0x1eb   : > { %vm295_vm5 = vcmp.eq.f32.partialorder %v292_v60, %v294_v0  ;;  %v300_v7 = vcvt.f32.s32 %v294_v0 }
 0x1ec   : > { %v296_v3 = vsel %vm295_vm5, %v291_v1, inf  ;;  %vm626_vm5 = vcmask 7168  }
 0x1ed   : > { %297 = vmin.xlane.f32.xlu1 %v296_v3  ;;  %v301_v9 = vshll.u32 %v300_v7, 16 }
 0x1ee   : > { %v309_v4 = vpop.xlane.xlu1 %308 }
 0x1ef   : > { %vm310_vm6 = vcmp.eq.f32.partialorder %v307_v62, %v309_v4  ;;  %v315_v10 = vcvt.f32.s32 %v309_v4 }
 0x1f0   : > { %v311_v6 = vsel %vm310_vm6, %v306_v5, inf  ;;  %vm629_vm6 = vcmask 15360  }
 0x1f1   : > { %312 = vmin.xlane.f32.xlu1 %v311_v6  ;;  %v316_v14 = vshll.u32 %v315_v10, 16 }
 0x276   : > { %v298_v8 = vpop.xlane.xlu1 %297 }
 0x277   : > { %v299_v11 = vcvt.f32.s32 %v298_v8 }
 0x279   : > { %v875_v12 = vadd.s32 %v301_v9, %v299_v11 }
 0x27a   : > { %v313_v13 = vpop.xlane.xlu1 %312 }
 0x27b   : > { %v314_v15 = vcvt.f32.s32 %v313_v13  ;;  %vm318_vm7 = vcmp.eq.s32.totalorder %v869_v52, %v875_v12 }
 0x27c   : > { %v320_v16 = vsel %vm318_vm7, -inf, %v273_v48 }
 0x27d   : > { %v879_v17 = vadd.s32 %v316_v14, %v314_v15  ;;  %v322_v18 = vsel %vm277_vm2, %v320_v16, -inf }
 0x27e   : > { %323 = vmax.xlane.f32.xlu1 %v322_v18 }
 0x27f   : > { %vm319_vm8 = vcmp.eq.s32.totalorder %v869_v52, %v879_v17 }
 0x280   : > { %v321_v19 = vsel %vm319_vm8, -inf, %v274_v49 }
 0x281   : > { %v325_v20 = vsel %vm277_vm2, %v321_v19, -inf }
 0x282   : > { %326 = vmax.xlane.f32.xlu0 %v325_v20 }
 0x307   : > { %v324_v21 = vpop.xlane.xlu1 %323 }
 0x308   : > { %vm328_vm9 = vcmp.eq.f32.partialorder %v320_v16, %v324_v21 }
 0x309   : > { %v330_v22 = vsel %vm328_vm9, %v869_v52, 16 }
 0x30a   : > { %v332_v23 = vsel %vm277_vm2, %v330_v22, 2147483647 }
 0x30b   : > { %v327_v24 = vpop.xlane.xlu0 %326  ;;  %v334_v25 = vshra.s32 %v332_v23, 16  ;;  %v333_v31 = vand.u32 65535, %v332_v23 }
 0x30c   : > { %vm329_vm10 = vcmp.eq.f32.partialorder %v321_v19, %v327_v24 }
 0x30d   : > { %v331_v26 = vsel %vm329_vm10, %v869_v52, 16  ;;  %v336_v27 = vcvt.s32.f32 %v334_v25  ;;  %v335_v33 = vcvt.s32.f32 %v333_v31 }
 0x30e   : > { %v347_v28 = vsel %vm277_vm2, %v331_v26, 2147483647 }
 0x30f   : > { %337 = vmin.xlane.f32.xlu1 %v336_v27  ;;  %v349_v29 = vshra.s32 %v347_v28, 16  ;;  %v348_v34 = vand.u32 65535, %v347_v28 }
 0x311   : > { %v351_v30 = vcvt.s32.f32 %v349_v29  ;;  %v350_v37 = vcvt.s32.f32 %v348_v34 }
 0x313   : > { %352 = vmin.xlane.f32.xlu0 %v351_v30 }
 0x398   : > { %v338_v32 = vpop.xlane.xlu1 %337 }
 0x399   : > { %vm339_vm11 = vcmp.eq.f32.partialorder %v336_v27, %v338_v32  ;;  %v344_v39 = vcvt.f32.s32 %v338_v32 }
 0x39a   : > { %v340_v35 = vsel %vm339_vm11, %v335_v33, inf }
 0x39b   : > { %341 = vmin.xlane.f32.xlu1 %v340_v35  ;;  %v345_v41 = vshll.u32 %v344_v39, 16 }
 0x39c   : > { %v353_v36 = vpop.xlane.xlu0 %352 }
 0x39d   : > { %vm354_vm12 = vcmp.eq.f32.partialorder %v351_v30, %v353_v36  ;;  %v359_v42 = vcvt.f32.s32 %v353_v36 }
 0x39e   : > { %v355_v38 = vsel %vm354_vm12, %v350_v37, inf }
 0x39f   : > { %356 = vmin.xlane.f32.xlu0 %v355_v38  ;;  %v360_v46 = vshll.u32 %v359_v42, 16 }
 0x424   : > { %v342_v40 = vpop.xlane.xlu1 %341 }
 0x425   : > { %v343_v43 = vcvt.f32.s32 %v342_v40 }
 0x427   : > { %v346_v44 = vadd.s32 %v345_v41, %v343_v43 }
 0x428   : > { %v357_v45 = vpop.xlane.xlu0 %356 }
 0x429   : > { %v358_v47 = vcvt.f32.s32 %v357_v45  ;;  %vm362_vm13 = vcmp.eq.s32.totalorder %v869_v52, %v346_v44  ;;  %v627_v15 = vsel %vm626_vm5, %v875_v12, %v346_v44 }
 0x42a   : > { %v364_v48 = vsel %vm362_vm13, -inf, %v320_v16 }
 0x42b   : > { %v361_v49 = vadd.s32 %v360_v46, %v358_v47  ;;  %v366_v50 = vsel %vm277_vm2, %v364_v48, -inf }
 0x42c   : > { %367 = vmax.xlane.f32.xlu1 %v366_v50 }
 0x42d   : > { %vm363_vm14 = vcmp.eq.s32.totalorder %v869_v52, %v361_v49  ;;  %v628_v24 = vsel %vm626_vm5, %v879_v17, %v361_v49 }
 0x42e   : > { %v365_v51 = vsel %vm363_vm14, -inf, %v321_v19 }
 0x42f   : > { %v369_v53 = vsel %vm277_vm2, %v365_v51, -inf }
 0x430   : > { %370 = vmax.xlane.f32.xlu0 %v369_v53 }
 0x4b5   : > { %v368_v54 = vpop.xlane.xlu1 %367 }
 0x4b6   : > { %vm372_vm15 = vcmp.eq.f32.partialorder %v364_v48, %v368_v54 }
 0x4b7   : > { %v374_v55 = vsel %vm372_vm15, %v869_v52, 16 }
 0x4b8   : > { %v376_v56 = vsel %vm277_vm2, %v374_v55, 2147483647 }
 0x4b9   : > { %v371_v57 = vpop.xlane.xlu0 %370  ;;  %v378_v58 = vshra.s32 %v376_v56, 16  ;;  %v377_v0 = vand.u32 65535, %v376_v56 }
 0x4ba   : > { %vm373_vm1 = vcmp.eq.f32.partialorder %v365_v51, %v371_v57 }
 0x4bb   : > { %v375_v59 = vsel %vm373_vm1, %v869_v52, 16  ;;  %v380_v60 = vcvt.s32.f32 %v378_v58  ;;  %v379_v2 = vcvt.s32.f32 %v377_v0 }
 0x4bc   : > { %v391_v61 = vsel %vm277_vm2, %v375_v59, 2147483647 }
 0x4bd   : > { %381 = vmin.xlane.f32.xlu1 %v380_v60  ;;  %v393_v62 = vshra.s32 %v391_v61, 16  ;;  %v392_v3 = vand.u32 65535, %v391_v61 }
 0x4bf   : > { %v395_v63 = vcvt.s32.f32 %v393_v62  ;;  %v394_v6 = vcvt.s32.f32 %v392_v3 }
 0x4c1   : > { %396 = vmin.xlane.f32.xlu0 %v395_v63 }
 0x546   : > { %v382_v1 = vpop.xlane.xlu1 %381 }
 0x547   : > { %vm383_vm3 = vcmp.eq.f32.partialorder %v380_v60, %v382_v1  ;;  %v388_v8 = vcvt.f32.s32 %v382_v1 }
 0x548   : > { %v384_v4 = vsel %vm383_vm3, %v379_v2, inf }
 0x549   : > { %385 = vmin.xlane.f32.xlu1 %v384_v4  ;;  %v389_v10 = vshll.u32 %v388_v8, 16 }
 0x54a   : > { %v397_v5 = vpop.xlane.xlu0 %396 }
 0x54b   : > { %vm398_vm4 = vcmp.eq.f32.partialorder %v395_v63, %v397_v5  ;;  %v403_v11 = vcvt.f32.s32 %v397_v5 }
 0x54c   : > { %v399_v7 = vsel %vm398_vm4, %v394_v6, inf  ;;  %vm634_vm4 = vcmask 31744  }
 0x54d   : > { %400 = vmin.xlane.f32.xlu0 %v399_v7  ;;  %v404_v18 = vshll.u32 %v403_v11, 16 }
 0x5d2   : > { %v386_v9 = vpop.xlane.xlu1 %385 }
 0x5d3   : > { %v387_v13 = vcvt.f32.s32 %v386_v9 }
 0x5d5   : > { %v390_v14 = vadd.s32 %v389_v10, %v387_v13 }
 0x5d6   : > { %v401_v16 = vpop.xlane.xlu0 %400 }
 0x5d7   : > { %v630_v19 = vsel %vm629_vm6, %v627_v15, %v390_v14  ;;  %v402_v20 = vcvt.f32.s32 %v401_v16  ;;  %vm406_vm7 = vcmp.eq.s32.totalorder %v869_v52, %v390_v14 }
 0x5d8   : > { %v408_v21 = vsel %vm406_vm7, -inf, %v364_v48 }
 0x5d9   : > { %v405_v22 = vadd.s32 %v404_v18, %v402_v20  ;;  %v410_v23 = vsel %vm277_vm2, %v408_v21, -inf }
 0x5da   : > { %411 = vmax.xlane.f32.xlu1 %v410_v23 }
 0x5db   : > { %v631_v25 = vsel %vm629_vm6, %v628_v24, %v405_v22  ;;  %vm407_vm8 = vcmp.eq.s32.totalorder %v869_v52, %v405_v22 }
 0x5dc   : > { %v409_v26 = vsel %vm407_vm8, -inf, %v365_v51 }
 0x5dd   : > { %v413_v27 = vsel %vm277_vm2, %v409_v26, -inf }
 0x5de   : > { %414 = vmax.xlane.f32.xlu0 %v413_v27 }
 0x663   : > { %v412_v12 = vpop.xlane.xlu1 %411 }
 0x664   : > { %vm416_vm9 = vcmp.eq.f32.partialorder %v408_v21, %v412_v12 }
 0x665   : > { %v418_v28 = vsel %vm416_vm9, %v869_v52, 16 }
 0x666   : > { %v420_v29 = vsel %vm277_vm2, %v418_v28, 2147483647 }
 0x667   : > { %v415_v30 = vpop.xlane.xlu0 %414  ;;  %v422_v31 = vshra.s32 %v420_v29, 16  ;;  %v421_v36 = vand.u32 65535, %v420_v29 }
 0x668   : > { %vm417_vm10 = vcmp.eq.f32.partialorder %v409_v26, %v415_v30 }
 0x669   : > { %v419_v32 = vsel %vm417_vm10, %v869_v52, 16  ;;  %v424_v17 = vcvt.s32.f32 %v422_v31  ;;  %v423_v38 = vcvt.s32.f32 %v421_v36 }
 0x66a   : > { %v435_v33 = vsel %vm277_vm2, %v419_v32, 2147483647 }
 0x66b   : > { %425 = vmin.xlane.f32.xlu1 %v424_v17  ;;  %v437_v34 = vshra.s32 %v435_v33, 16  ;;  %v436_v39 = vand.u32 65535, %v435_v33 }
 0x66d   : > { %v439_v35 = vcvt.s32.f32 %v437_v34  ;;  %v438_v42 = vcvt.s32.f32 %v436_v39 }
 0x66f   : > { %440 = vmin.xlane.f32.xlu0 %v439_v35 }
 0x6f4   : > { %v426_v37 = vpop.xlane.xlu1 %425 }
 0x6f5   : > { %vm427_vm11 = vcmp.eq.f32.partialorder %v424_v17, %v426_v37  ;;  %v432_v44 = vcvt.f32.s32 %v426_v37 }
 0x6f6   : > { %v428_v40 = vsel %vm427_vm11, %v423_v38, inf  ;;  %vm637_vm11 = vcmask 39936  }
 0x6f7   : > { %429 = vmin.xlane.f32.xlu1 %v428_v40  ;;  %v433_v46 = vshll.u32 %v432_v44, 16 }
 0x6f8   : > { %v441_v41 = vpop.xlane.xlu0 %440 }
 0x6f9   : > { %vm442_vm12 = vcmp.eq.f32.partialorder %v439_v35, %v441_v41  ;;  %v447_v47 = vcvt.f32.s32 %v441_v41 }
 0x6fa   : > { %v443_v43 = vsel %vm442_vm12, %v438_v42, inf }
 0x6fb   : > { %444 = vmin.xlane.f32.xlu0 %v443_v43  ;;  %v448_v51 = vshll.u32 %v447_v47, 16 }
 0x780   : > { %v430_v45 = vpop.xlane.xlu1 %429 }
 0x781   : > { %v431_v48 = vcvt.f32.s32 %v430_v45 }
 0x783   : > { %v434_v49 = vadd.s32 %v433_v46, %v431_v48 }
 0x784   : > { %v445_v50 = vpop.xlane.xlu0 %444 }
 0x785   : > { %v632_v53 = vsel %vm253_vm0, %v630_v19, %v434_v49  ;;  %v446_v54 = vcvt.f32.s32 %v445_v50  ;;  %vm450_vm13 = vcmp.eq.s32.totalorder %v869_v52, %v434_v49 }
 0x786   : > { %v452_v55 = vsel %vm450_vm13, -inf, %v408_v21 }
 0x787   : > { %v449_v56 = vadd.s32 %v448_v51, %v446_v54  ;;  %v454_v57 = vsel %vm277_vm2, %v452_v55, -inf }
 0x788   : > { %455 = vmax.xlane.f32.xlu1 %v454_v57 }
 0x789   : > { %v633_v58 = vsel %vm253_vm0, %v631_v25, %v449_v56  ;;  %vm451_vm14 = vcmp.eq.s32.totalorder %v869_v52, %v449_v56 }
 0x78a   : > { %v453_v59 = vsel %vm451_vm14, -inf, %v409_v26 }
 0x78b   : > { %v457_v60 = vsel %vm277_vm2, %v453_v59, -inf }
 0x78c   : > { %458 = vmax.xlane.f32.xlu0 %v457_v60 }
 0x811   : > { %v456_v61 = vpop.xlane.xlu1 %455 }
 0x812   : > { %vm460_vm15 = vcmp.eq.f32.partialorder %v452_v55, %v456_v61 }
 0x813   : > { %v462_v62 = vsel %vm460_vm15, %v869_v52, 16 }
 0x814   : > { %v464_v63 = vsel %vm277_vm2, %v462_v62, 2147483647 }
 0x815   : > { %v459_v0 = vpop.xlane.xlu0 %458  ;;  %v466_v1 = vshra.s32 %v464_v63, 16  ;;  %v465_v7 = vand.u32 65535, %v464_v63 }
 0x816   : > { %vm461_vm1 = vcmp.eq.f32.partialorder %v453_v59, %v459_v0 }
 0x817   : > { %v463_v2 = vsel %vm461_vm1, %v869_v52, 16  ;;  %v468_v3 = vcvt.s32.f32 %v466_v1  ;;  %v467_v9 = vcvt.s32.f32 %v465_v7 }
 0x818   : > { %v479_v4 = vsel %vm277_vm2, %v463_v2, 2147483647 }
 0x819   : > { %469 = vmin.xlane.f32.xlu1 %v468_v3  ;;  %v481_v5 = vshra.s32 %v479_v4, 16  ;;  %v480_v10 = vand.u32 65535, %v479_v4 }
 0x81b   : > { %v483_v6 = vcvt.s32.f32 %v481_v5  ;;  %v482_v14 = vcvt.s32.f32 %v480_v10 }
 0x81d   : > { %484 = vmin.xlane.f32.xlu0 %v483_v6 }
 0x8a2   : > { %v470_v8 = vpop.xlane.xlu1 %469 }
 0x8a3   : > { %vm471_vm0 = vcmp.eq.f32.partialorder %v468_v3, %v470_v8  ;;  %v476_v16 = vcvt.f32.s32 %v470_v8 }
 0x8a4   : > { %v472_v11 = vsel %vm471_vm0, %v467_v9, inf }
 0x8a5   : > { %473 = vmin.xlane.f32.xlu1 %v472_v11  ;;  %v477_v19 = vshll.u32 %v476_v16, 16 }
 0x8a6   : > { %v485_v13 = vpop.xlane.xlu0 %484 }
 0x8a7   : > { %vm486_vm3 = vcmp.eq.f32.partialorder %v483_v6, %v485_v13  ;;  %v491_v20 = vcvt.f32.s32 %v485_v13 }
 0x8a8   : > { %v487_v15 = vsel %vm486_vm3, %v482_v14, inf  ;;  %vm640_vm3 = vcmask 48128  }
 0x8a9   : > { %488 = vmin.xlane.f32.xlu0 %v487_v15  ;;  %v492_v24 = vshll.u32 %v491_v20, 16 }
 0x92e   : > { %v474_v18 = vpop.xlane.xlu1 %473 }
 0x92f   : > { %v475_v21 = vcvt.f32.s32 %v474_v18 }
 0x931   : > { %v478_v22 = vadd.s32 %v477_v19, %v475_v21 }
 0x932   : > { %v489_v23 = vpop.xlane.xlu0 %488 }
 0x933   : > { %v635_v25 = vsel %vm634_vm4, %v632_v53, %v478_v22  ;;  %v490_v26 = vcvt.f32.s32 %v489_v23  ;;  %vm494_vm5 = vcmp.eq.s32.totalorder %v869_v52, %v478_v22 }
 0x934   : > { %v496_v27 = vsel %vm494_vm5, -inf, %v452_v55 }
 0x935   : > { %v493_v12 = vadd.s32 %v492_v24, %v490_v26  ;;  %v498_v28 = vsel %vm277_vm2, %v496_v27, -inf }
 0x936   : > { %499 = vmax.xlane.f32.xlu1 %v498_v28 }
 0x937   : > { %v636_v29 = vsel %vm634_vm4, %v633_v58, %v493_v12  ;;  %vm495_vm6 = vcmp.eq.s32.totalorder %v869_v52, %v493_v12 }
 0x938   : > { %v497_v30 = vsel %vm495_vm6, -inf, %v453_v59 }
 0x939   : > { %v501_v31 = vsel %vm277_vm2, %v497_v30, -inf }
 0x93a   : > { %502 = vmax.xlane.f32.xlu0 %v501_v31 }
 0x9bf   : > { %v500_v32 = vpop.xlane.xlu1 %499 }
 0x9c0   : > { %vm504_vm7 = vcmp.eq.f32.partialorder %v496_v27, %v500_v32 }
 0x9c1   : > { %v506_v17 = vsel %vm504_vm7, %v869_v52, 16 }
 0x9c2   : > { %v508_v33 = vsel %vm277_vm2, %v506_v17, 2147483647 }
 0x9c3   : > { %v503_v34 = vpop.xlane.xlu0 %502  ;;  %v510_v35 = vshra.s32 %v508_v33, 16  ;;  %v509_v41 = vand.u32 65535, %v508_v33 }
 0x9c4   : > { %vm505_vm8 = vcmp.eq.f32.partialorder %v497_v30, %v503_v34 }
 0x9c5   : > { %v507_v36 = vsel %vm505_vm8, %v869_v52, 16  ;;  %v512_v37 = vcvt.s32.f32 %v510_v35  ;;  %v511_v43 = vcvt.s32.f32 %v509_v41 }
 0x9c6   : > { %v523_v38 = vsel %vm277_vm2, %v507_v36, 2147483647 }
 0x9c7   : > { %513 = vmin.xlane.f32.xlu1 %v512_v37  ;;  %v525_v39 = vshra.s32 %v523_v38, 16  ;;  %v524_v44 = vand.u32 65535, %v523_v38 }
 0x9c9   : > { %v527_v40 = vcvt.s32.f32 %v525_v39  ;;  %v526_v47 = vcvt.s32.f32 %v524_v44 }
 0x9cb   : > { %528 = vmin.xlane.f32.xlu0 %v527_v40 }
 0xa50   : > { %v514_v42 = vpop.xlane.xlu1 %513 }
 0xa51   : > { %vm515_vm9 = vcmp.eq.f32.partialorder %v512_v37, %v514_v42  ;;  %v520_v49 = vcvt.f32.s32 %v514_v42 }
 0xa52   : > { %v516_v45 = vsel %vm515_vm9, %v511_v43, inf }
 0xa53   : > { %517 = vmin.xlane.f32.xlu1 %v516_v45  ;;  %v521_v51 = vshll.u32 %v520_v49, 16 }
 0xa54   : > { %v529_v46 = vpop.xlane.xlu0 %528 }
 0xa55   : > { %vm530_vm10 = vcmp.eq.f32.partialorder %v527_v40, %v529_v46  ;;  %v535_v53 = vcvt.f32.s32 %v529_v46 }
 0xa56   : > { %v531_v48 = vsel %vm530_vm10, %v526_v47, inf  ;;  %vm646_vm10 = vcmask 64512  }
 0xa57   : > { %532 = vmin.xlane.f32.xlu0 %v531_v48  ;;  %v536_v57 = vshll.u32 %v535_v53, 16 }
 0xadc   : > { %v518_v50 = vpop.xlane.xlu1 %517 }
 0xadd   : > { %v519_v54 = vcvt.f32.s32 %v518_v50 }
 0xadf   : > { %v522_v55 = vadd.s32 %v521_v51, %v519_v54 }
 0xae0   : > { %v533_v56 = vpop.xlane.xlu0 %532 }
 0xae1   : > { %v638_v58 = vsel %vm637_vm11, %v635_v25, %v522_v55  ;;  %v534_v59 = vcvt.f32.s32 %v533_v56  ;;  %vm538_vm12 = vcmp.eq.s32.totalorder %v869_v52, %v522_v55 }
 0xae2   : > { %v540_v60 = vsel %vm538_vm12, -inf, %v496_v27 }
 0xae3   : > { %v537_v61 = vadd.s32 %v536_v57, %v534_v59  ;;  %v542_v62 = vsel %vm277_vm2, %v540_v60, -inf }
 0xae4   : > { %543 = vmax.xlane.f32.xlu1 %v542_v62 }
 0xae5   : > { %v639_v63 = vsel %vm637_vm11, %v636_v29, %v537_v61  ;;  %vm539_vm13 = vcmp.eq.s32.totalorder %v869_v52, %v537_v61 }
 0xae6   : > { %v541_v0 = vsel %vm539_vm13, -inf, %v497_v30 }
 0xae7   : > { %v545_v1 = vsel %vm277_vm2, %v541_v0, -inf }
 0xae8   : > { %546 = vmax.xlane.f32.xlu0 %v545_v1 }
 0xb6d   : > { %v544_v2 = vpop.xlane.xlu1 %543 }
 0xb6e   : > { %vm548_vm14 = vcmp.eq.f32.partialorder %v540_v60, %v544_v2 }
 0xb6f   : > { %v550_v3 = vsel %vm548_vm14, %v869_v52, 16 }
 0xb70   : > { %v552_v4 = vsel %vm277_vm2, %v550_v3, 2147483647 }
 0xb71   : > { %v547_v5 = vpop.xlane.xlu0 %546  ;;  %v554_v6 = vshra.s32 %v552_v4, 16  ;;  %v553_v13 = vand.u32 65535, %v552_v4 }
 0xb72   : > { %vm549_vm15 = vcmp.eq.f32.partialorder %v541_v0, %v547_v5 }
 0xb73   : > { %v551_v7 = vsel %vm549_vm15, %v869_v52, 16  ;;  %v556_v8 = vcvt.s32.f32 %v554_v6  ;;  %v555_v15 = vcvt.s32.f32 %v553_v13 }
 0xb74   : > { %v567_v9 = vsel %vm277_vm2, %v551_v7, 2147483647 }
 0xb75   : > { %557 = vmin.xlane.f32.xlu1 %v556_v8  ;;  %v569_v10 = vshra.s32 %v567_v9, 16  ;;  %v568_v16 = vand.u32 65535, %v567_v9 }
 0xb77   : > { %v571_v11 = vcvt.s32.f32 %v569_v10  ;;  %v570_v20 = vcvt.s32.f32 %v568_v16 }
 0xb79   : > { %572 = vmin.xlane.f32.xlu0 %v571_v11 }
 0xbfe   : > { %v558_v14 = vpop.xlane.xlu1 %557 }
 0xbff   : > { %vm559_vm1 = vcmp.eq.f32.partialorder %v556_v8, %v558_v14  ;;  %v564_v22 = vcvt.f32.s32 %v558_v14 }
 0xc00   : > { %v560_v18 = vsel %vm559_vm1, %v555_v15, inf }
 0xc01   : > { %561 = vmin.xlane.f32.xlu1 %v560_v18  ;;  %v565_v24 = vshll.u32 %v564_v22, 16 }
 0xc02   : > { %v573_v19 = vpop.xlane.xlu0 %572 }
 0xc03   : > { %vm574_vm0 = vcmp.eq.f32.partialorder %v571_v11, %v573_v19  ;;  %v579_v25 = vcvt.f32.s32 %v573_v19 }
 0xc04   : > { %v575_v21 = vsel %vm574_vm0, %v570_v20, inf }
 0xc05   : > { %576 = vmin.xlane.f32.xlu0 %v575_v21  ;;  %v580_v28 = vshll.u32 %v579_v25, 16 }
 0xc8a   : > { %v562_v23 = vpop.xlane.xlu1 %561 }
 0xc8b   : > { %v563_v26 = vcvt.f32.s32 %v562_v23 }
 0xc8d   : > { %v566_v27 = vadd.s32 %v565_v24, %v563_v26 }
 0xc8e   : > { %v577_v12 = vpop.xlane.xlu0 %576 }
 0xc8f   : > { %v641_v29 = vsel %vm640_vm3, %v638_v58, %v566_v27  ;;  %v578_v30 = vcvt.f32.s32 %v577_v12  ;;  %vm582_vm4 = vcmp.eq.s32.totalorder %v869_v52, %v566_v27 }
 0xc90   : > { %v584_v31 = vsel %vm582_vm4, -inf, %v540_v60 }
 0xc91   : > { %v581_v32 = vadd.s32 %v580_v28, %v578_v30  ;;  %v586_v17 = vsel %vm277_vm2, %v584_v31, -inf }
 0xc92   : > { %587 = vmax.xlane.f32.xlu1 %v586_v17 }
 0xc93   : > { %v642_v33 = vsel %vm640_vm3, %v639_v63, %v581_v32  ;;  %vm583_vm5 = vcmp.eq.s32.totalorder %v869_v52, %v581_v32 }
 0xc94   : > { %v585_v34 = vsel %vm583_vm5, -inf, %v541_v0 }
 0xc95   : > { %v589_v35 = vsel %vm277_vm2, %v585_v34, -inf }
 0xc96   : > { %590 = vmax.xlane.f32.xlu0 %v589_v35 }
 0xd1b   : > { %v588_v36 = vpop.xlane.xlu1 %587 }
 0xd1c   : > { %vm592_vm6 = vcmp.eq.f32.partialorder %v584_v31, %v588_v36 }
 0xd1d   : > { %v594_v37 = vsel %vm592_vm6, %v869_v52, 16 }
 0xd1e   : > { %v596_v38 = vsel %vm277_vm2, %v594_v37, 2147483647 }
 0xd1f   : > { %v591_v39 = vpop.xlane.xlu0 %590  ;;  %v598_v40 = vshra.s32 %v596_v38, 16  ;;  %v597_v46 = vand.u32 65535, %v596_v38 }
 0xd20   : > { %vm593_vm7 = vcmp.eq.f32.partialorder %v585_v34, %v591_v39 }
 0xd21   : > { %v595_v41 = vsel %vm593_vm7, %v869_v52, 16  ;;  %v600_v42 = vcvt.s32.f32 %v598_v40  ;;  %v599_v48 = vcvt.s32.f32 %v597_v46 }
 0xd22   : > { %v611_v43 = vsel %vm277_vm2, %v595_v41, 2147483647  ;;  %vm643_vm2 = vcmask 56320  }
 0xd23   : > { %601 = vmin.xlane.f32.xlu1 %v600_v42  ;;  %v613_v44 = vshra.s32 %v611_v43, 16  ;;  %v612_v49 = vand.u32 65535, %v611_v43 }
 0xd25   : > { %v615_v45 = vcvt.s32.f32 %v613_v44  ;;  %v614_v53 = vcvt.s32.f32 %v612_v49 }
 0xd27   : > { %616 = vmin.xlane.f32.xlu0 %v615_v45 }
 0xdac   : > { %v602_v47 = vpop.xlane.xlu1 %601 }
 0xdad   : > { %vm603_vm8 = vcmp.eq.f32.partialorder %v600_v42, %v602_v47  ;;  %v608_v52 = vcvt.f32.s32 %v602_v47 }
 0xdae   : > { %v604_v50 = vsel %vm603_vm8, %v599_v48, inf }
 0xdaf   : > { %605 = vmin.xlane.f32.xlu1 %v604_v50  ;;  %v609_v56 = vshll.u32 %v608_v52, 16 }
 0xdb0   : > { %v617_v51 = vpop.xlane.xlu0 %616 }
 0xdb1   : > { %vm618_vm9 = vcmp.eq.f32.partialorder %v615_v45, %v617_v51  ;;  %v623_v57 = vcvt.f32.s32 %v617_v51 }
 0xdb2   : > { %v619_v54 = vsel %vm618_vm9, %v614_v53, inf }
 0xdb3   : > { %620 = vmin.xlane.f32.xlu0 %v619_v54  ;;  %v624_v61 = vshll.u32 %v623_v57, 16 }
 0xe38   : > { %v606_v55 = vpop.xlane.xlu1 %605 }
 0xe39   : > { %v607_v58 = vcvt.f32.s32 %v606_v55 }
 0xe3b   : > { %v610_v59 = vadd.s32 %v609_v56, %v607_v58 }
 0xe3c   : > { %v621_v60 = vpop.xlane.xlu0 %620 }
 0xe3d   : > { %v644_v62 = vsel %vm643_vm2, %v641_v29, %v610_v59  ;;  %v622_v63 = vcvt.f32.s32 %v621_v60 }
 0xe3e   : > { %647 = vst.msk [vmem:[%s198_s23] sm:$0xff] %vm646_vm10, %v644_v62 }
 0xe3f   : > { %v625_v0 = vadd.s32 %v624_v61, %v622_v63 }
 0xe41   : > { %v645_v1 = vsel %vm643_vm2, %v642_v33, %v625_v0 }
 0xe42   : > { %648 = vst.msk [vmem:[%s198_s23 + $0x8] sm:$0xff] %vm646_vm10, %v645_v1 }
 0xe43 PF: > { %s12_s11 = sadd.s32 1, %s815_s11   ;;  %s958_s9 = smov %s811_s10 }
 0xe44   : > { %p9_p5 = scmp.ge.s32.totalorder %s12_s11, 4   ;;  %s959_s10 = smov %s961_s12 }
 0xe46   :  { %11 = sbr.rel (!%p9_p5) target bundleno = 2 (0x2), region = 61 }

// kernel: feature_extractor_forward.3
= control target key start
LH: loop header
LB: loop body
LE: loop exit
PB: predicated region body
PF: predicated region fallthrough
CT: control target
= control target key end

     0   :  { %s2621_s17 = smov 0   ;;  %s2623_s18 = smov 0   ;;  %s3136_s0 = inlined_call_operand.vmem [shape: f32[2,128,3], index: 0, kind: input, shape index: {}]   ;;  %s3137_s1 = inlined_call_operand.vmem [shape: f32[3,32], index: 1, kind: input, shape index: {}]   ;;  %s3138_s2 = inlined_call_operand.vmem [shape: f32[1,32], index: 2, kind: input, shape index: {}]   ;;  %s3139_s3 = inlined_call_operand.vmem [shape: f32[32,32], index: 3, kind: input, shape index: {}]   ;;  %s3140_s4 = inlined_call_operand.vmem [shape: f32[1,32], index: 4, kind: input, shape index: {}]   ;;  %s3141_s5 = inlined_call_operand.vmem [shape: f32[32,64], index: 5, kind: input, shape index: {}]   ;;  %s3142_s6 = inlined_call_operand.vmem [shape: f32[1,64], index: 6, kind: input, shape index: {}]   ;;  %s3143_s7 = inlined_call_operand.vmem [shape: f32[64,128], index: 7, kind: input, shape index: {}]   ;;  %s3144_s8 = inlined_call_operand.vmem [shape: f32[1,128], index: 8, kind: input, shape index: {}]   ;;  %s3145_s9 = inlined_call_operand.vmem [shape: f32[32,256], index: 9, kind: input, shape index: {}]   ;;  %s3146_s10 = inlined_call_operand.vmem [shape: f32[32,1], index: 10, kind: input, shape index: {}]   ;;  %s3147_s11 = inlined_call_operand.vmem [shape: f32[2,32,16], index: 11, kind: output, shape index: {}]  }
   0x1   :  { %s2625_s19 = smov 0  }
   0x2 LB: > { %s33_s20 = sadd.s32 1, %s2550_s18  ;;  %p2237_p0 = scmp.ge.s32.totalorder %s2554_s19, 1  ;;  %s2554_s19 = sphi %s2625_s19, %s21_s19   ;;  %s2550_s18 = sphi %s2623_s18, %s3149_s18   ;;  %s2546_s17 = sphi %s2621_s17, %s3148_s17  }
   0x3   : > { %p35_p1 = scmp.ge.s32.totalorder %s33_s20, 2  ;;  %p358_p2 = scmp.lt.s32.totalorder %s2554_s19, 3 }
   0x5   : > { %s3151_s20 = smov (%p35_p1, %s33_s20), 0  ;;  %p359_p3 = pnand %p2237_p0, %p358_p2 }
   0x6   : > { %p406_p4 = scmp.lt.s32.totalorder (!%p359_p3), %s2546_s17, 1  ;;  %s2559_s25 = smov (!%p359_p3), 32  }
   0x7   : > { %362 = sbr.rel (%p359_p3) target bundleno = 1123 (0x463), region = 64 }
   0xc   : > { %v2556_v0 = vmov 1   ;;  %v2557_v1 = vmov 0   ;;  %s3153_s17 = smov (!%p406_p4, %s2546_s17), 1  ;;  %v2558_v5 = vmov 2   ;;  %v895_v14 = vld [vmem:[%s3139_s3 + $0x18] sm:$0xff]  ;;  %v894_v15 = vld [vmem:[%s3139_s3 + $0x10] sm:$0xff]  ;;  %v520_v22 = vlaneseq }
   0xd   : > { %2503 = vset.pattern.permute.xlu0 %v2556_v0  ;;  %2505 = vset.pattern.permute.xlu1 %v2557_v1  ;;  %s2296_s21 = sshll.u32 %s3153_s17, 7  ;;  %v893_v16 = vld [vmem:[%s3139_s3 + $0x8] sm:$0xff]  ;;  %v892_v17 = vld [vmem:[%s3139_s3] sm:$0xff]  ;;  %vm779_vm0 = vcmask 261120   ;;  %vm1893_vm1 = vcmask 1041409   ;;  %vm1895_vm2 = vcmask 1042434  }
   0xe   : > { %s2647_s24 = scalar_lea.vmem %s3136_s0, %s2296_s21  ;;  %2362 = vmatprep.subr.mxu0 %v895_v14  ;;  %2466 = vmatprep.subr.mxu1 %v895_v14  ;;  %v521_v23 = vshrl.u32 %v520_v22, 7  ;;  %v439_v28 = vld [vmem:[%s3137_s1] sm:$0x7]  ;;  %vm1897_vm3 = vcmask 1043459   ;;  %vm1899_vm4 = vcmask 1044484   ;;  %vm1901_vm5 = vcmask 1045509  }
   0xf   : > { %v424_v2 = vld [vmem:[%s2647_s24 + $0x8] sm:$0xff]  ;;  %v423_v3 = vld [vmem:[%s2647_s24] sm:$0xff]  ;;  %v426_v4 = vld [vmem:[%s2647_s24 + $0x18] sm:$0xff]  ;;  %2363 = vmatpush3.msra.mxu0 %v895_v14  ;;  %2470 = vmatpush3.msra.mxu1 %v895_v14  ;;  %vm1903_vm6 = vcmask 1046534   ;;  %vm1905_vm7 = vcmask 1047559   ;;  %vm1444_vm8 = vcmask 523264  }
  0x10   : > { %447 = vperm.xlu1 %2505, %v424_v2   ;;  %541 = vperm.xlu0 %2503, %v423_v3   ;;  %v428_v6 = vld [vmem:[%s2647_s24 + $0x28] sm:$0xff]  ;;  %v425_v7 = vld [vmem:[%s2647_s24 + $0x10] sm:$0xff]  ;;  %v430_v8 = vld [vmem:[%s2647_s24 + $0x38] sm:$0xff]  ;;  %v606_v24 = vsub.s32 1, %v521_v23  ;;  %v522_v25 = vsub.s32 0, %v521_v23  ;;  %v706_v31 = vsub.s32 2, %v521_v23 }
  0x11   : > { %v2660_v9 = vld [vmem:[%s2647_s24 + $0x48] sm:$0xff]  ;;  %v2665_v10 = vld [vmem:[%s2647_s24 + $0x58] sm:$0xff]  ;;  %v427_v13 = vld [vmem:[%s2647_s24 + $0x20] sm:$0xff]  ;;  %2364 = vmatprep.subr.mxu0 %v894_v15  ;;  %2467 = vmatprep.subr.mxu1 %v894_v15  ;;  %s2560_s21 = smov 64   ;;  %s2297_s14 = sshll.u32 %s3153_s17, 5  ;;  %vm2145_vm9 = vcmask 130048  }
  0x12   : > { %v2669_v11 = vld [vmem:[%s2647_s24 + $0x68] sm:$0xff]  ;;  %v2674_v12 = vld [vmem:[%s2647_s24 + $0x78] sm:$0xff]  ;;  %2365 = vmatpush3.msra.mxu0 %v894_v15  ;;  %2471 = vmatpush3.msra.mxu1 %v894_v15  ;;  %v429_v18 = vld [vmem:[%s2647_s24 + $0x30] sm:$0xff]  ;;  %v2721_v29 = vrot.slane %v439_v28, %v606_v24  ;;  %v2724_v32 = vrot.slane %v439_v28, %v522_v25  ;;  %v2729_v37 = vrot.slane %v439_v28, %v706_v31 }
  0x13   : > { %2366 = vmatprep.subr.mxu0 %v893_v16  ;;  %2468 = vmatprep.subr.mxu1 %v893_v16  ;;  %v431_v19 = vld [vmem:[%s2647_s24 + $0x40] sm:$0xff]  ;;  %v433_v20 = vld [vmem:[%s2647_s24 + $0x50] sm:$0xff] }
  0x14   : > { %2506 = vset.pattern.permute.xlu1 %v2556_v0  ;;  %2504 = vset.pattern.permute.xlu0 %v2557_v1  ;;  %v435_v21 = vld [vmem:[%s2647_s24 + $0x60] sm:$0xff]  ;;  %v437_v30 = vld [vmem:[%s2647_s24 + $0x70] sm:$0xff] }
  0x15   : > { %545 = vperm.xlu1 %2506, %v424_v2   ;;  %442 = vperm.xlu0 %2504, %v423_v3   ;;  %v2736_v42 = vld [vmem:[%s3138_s2] ss:$0 sm:$0xff] }
  0x16   : > { %2367 = vmatpush3.msra.mxu0 %v893_v16  ;;  %2472 = vmatpush3.msra.mxu1 %v893_v16 }
  0x17   : > { %2368 = vmatprep.subr.mxu0 %v892_v17  ;;  %2469 = vmatprep.subr.mxu1 %v892_v17 }
  0x18   : > { %2369 = vmatpush3.msra.mxu0 %v892_v17  ;;  %2473 = vmatpush3.msra.mxu1 %v892_v17 }
  0x19   : > { %2507 = vset.pattern.permute.xlu1 %v2558_v5  ;;  %457 = vperm.xlu0 %2504, %v426_v4  }
  0x1a   : > { %641 = vperm.xlu1 %2507, %v423_v3  }
  0x1d   : > { %467 = vperm.xlu0 %2504, %v428_v6  }
  0x1e   : > { %2508 = vset.pattern.permute.xlu1 %v2557_v1 }
  0x1f   : > { %452 = vperm.xlu1 %2508, %v425_v7  }
  0x21   : > { %477 = vperm.xlu0 %2504, %v430_v8  }
  0x23   : > { %2509 = vset.pattern.permute.xlu1 %v2556_v0 }
  0x24   : > { %549 = vperm.xlu1 %2509, %v425_v7  }
  0x25   : > { %487 = vperm.xlu0 %2504, %v2660_v9  }
  0x28   : > { %553 = vperm.xlu1 %2509, %v426_v4  }
  0x29   : > { %497 = vperm.xlu0 %2504, %v2665_v10  }
  0x2c   : > { %2510 = vset.pattern.permute.xlu1 %v2558_v5 }
  0x2d   : > { %649 = vperm.xlu1 %2510, %v425_v7   ;;  %507 = vperm.xlu0 %2504, %v2669_v11  }
  0x31   : > { %2511 = vset.pattern.permute.xlu1 %v2557_v1  ;;  %517 = vperm.xlu0 %2504, %v2674_v12  }
  0x32   : > { %462 = vperm.xlu1 %2511, %v427_v13  }
  0x35   : > { %2528 = vset.pattern.permute.xlu0 %v2558_v5 }
  0x36   : > { %2512 = vset.pattern.permute.xlu1 %v2556_v0  ;;  %645 = vperm.xlu0 %2528, %v424_v2  }
  0x37   : > { %557 = vperm.xlu1 %2512, %v427_v13  }
  0x3a   : > { %653 = vperm.xlu0 %2528, %v426_v4  }
  0x3b   : > { %561 = vperm.xlu1 %2512, %v428_v6  }
  0x3e   : > { %661 = vperm.xlu0 %2528, %v428_v6  }
  0x3f   : > { %2513 = vset.pattern.permute.xlu1 %v2558_v5 }
  0x40   : > { %657 = vperm.xlu1 %2513, %v427_v13  }
  0x42   : > { %669 = vperm.xlu0 %2528, %v430_v8  }
  0x44   : > { %2514 = vset.pattern.permute.xlu1 %v2557_v1 }
  0x45   : > { %472 = vperm.xlu1 %2514, %v429_v18  }
  0x46   : > { %677 = vperm.xlu0 %2528, %v2660_v9  }
  0x49   : > { %2515 = vset.pattern.permute.xlu1 %v2556_v0 }
  0x4a   : > { %565 = vperm.xlu1 %2515, %v429_v18   ;;  %685 = vperm.xlu0 %2528, %v2665_v10  }
  0x4e   : > { %569 = vperm.xlu1 %2515, %v430_v8   ;;  %693 = vperm.xlu0 %2528, %v2669_v11  }
  0x52   : > { %2516 = vset.pattern.permute.xlu1 %v2558_v5  ;;  %701 = vperm.xlu0 %2528, %v2674_v12  }
  0x53   : > { %665 = vperm.xlu1 %2516, %v429_v18  }
  0x56   : > { %2530 = vset.pattern.permute.xlu0 %v2557_v1 }
  0x57   : > { %2517 = vset.pattern.permute.xlu1 %v2557_v1 }
  0x58   : > { %482 = vperm.xlu1 %2517, %v431_v19  }
  0x5c   : > { %2518 = vset.pattern.permute.xlu1 %v2556_v0 }
  0x5d   : > { %573 = vperm.xlu1 %2518, %v431_v19  }
  0x61   : > { %577 = vperm.xlu1 %2518, %v2660_v9  }
  0x65   : > { %2519 = vset.pattern.permute.xlu1 %v2558_v5 }
  0x66   : > { %673 = vperm.xlu1 %2519, %v431_v19  }
  0x6a   : > { %2520 = vset.pattern.permute.xlu1 %v2557_v1 }
  0x6b   : > { %492 = vperm.xlu1 %2520, %v433_v20  }
  0x6f   : > { %2521 = vset.pattern.permute.xlu1 %v2556_v0 }
  0x70   : > { %581 = vperm.xlu1 %2521, %v433_v20  }
  0x74   : > { %585 = vperm.xlu1 %2521, %v2665_v10  }
  0x78   : > { %2522 = vset.pattern.permute.xlu1 %v2558_v5 }
  0x79   : > { %681 = vperm.xlu1 %2522, %v433_v20  }
  0x7d   : > { %2523 = vset.pattern.permute.xlu1 %v2557_v1 }
  0x7e   : > { %502 = vperm.xlu1 %2523, %v435_v21  }
  0x82   : > { %2524 = vset.pattern.permute.xlu1 %v2556_v0 }
  0x83   : > { %589 = vperm.xlu1 %2524, %v435_v21  }
  0x87   : > { %593 = vperm.xlu1 %2524, %v2669_v11  }
  0x8b   : > { %v448_v26 = vpop.permute.xlu1 %447  ;;  %2525 = vset.pattern.permute.xlu1 %v2558_v5  ;;  %v542_v27 = vpop.permute.xlu0 %541 }
  0x8c   : > { %689 = vperm.xlu1 %2525, %v435_v21   ;;  %v608_v33 = vmul.f32 %v2721_v29, %v542_v27 }
  0x90   : > { %v546_v34 = vpop.permute.xlu1 %545  ;;  %2526 = vset.pattern.permute.xlu1 %v2557_v1  ;;  %v443_v35 = vpop.permute.xlu0 %442 }
  0x91   : > { %512 = vperm.xlu1 %2526, %v437_v30   ;;  %v524_v36 = vmul.f32 %v2724_v32, %v443_v35  ;;  %v609_v62 = vmul.f32 %v2721_v29, %v546_v34 }
  0x93   : > { %v624_v38 = vadd.f32 %v608_v33, %v524_v36 }
  0x94   : > { %v458_v39 = vpop.permute.xlu0 %457 }
  0x95   : > { %2527 = vset.pattern.permute.xlu1 %v2556_v0  ;;  %v642_v40 = vpop.permute.xlu1 %641  ;;  %v527_v7 = vmul.f32 %v2724_v32, %v458_v39 }
  0x96   : > { %v708_v41 = vmul.f32 %v2729_v37, %v642_v40  ;;  %597 = vperm.xlu1 %2527, %v437_v30  }
  0x98   : > { %v724_v43 = vadd.f32 %v708_v41, %v624_v38  ;;  %v468_v44 = vpop.permute.xlu0 %467 }
  0x99   : > { %v529_v14 = vmul.f32 %v2724_v32, %v468_v44 }
  0x9a   : > { %601 = vperm.xlu1 %2527, %v2674_v12   ;;  %v453_v45 = vpop.permute.xlu1 %452  ;;  %v747_v46 = vadd.f32 %v2736_v42, %v724_v43 }
  0x9b   : > { %v526_v54 = vmul.f32 %v2724_v32, %v453_v45 }
  0x9c   : > { %v2740_v47 = vpop.permute.xlu0 %477  ;;  %v763_v48 = vmax.f32 %v747_v46, 0.0 }
  0x9e   : > { %2529 = vset.pattern.permute.xlu1 %v2558_v5  ;;  %2370 = vmatprep.mubr.msk.f32.mxu0 %vm779_vm0, %v763_v48  ;;  %v780_v60 = vsel %vm779_vm0, %v763_v48, -inf }
  0x9f   : > { %697 = vperm.xlu1 %2529, %v437_v30   ;;  %v550_v49 = vpop.permute.xlu1 %549  ;;  %v781_v2 = vrot.slane %v780_v60, 4 }
  0xa0   : > { %v2744_v50 = vpop.permute.xlu0 %487  ;;  %v610_v53 = vmul.f32 %v2721_v29, %v550_v49 }
  0xa1   : > { %v782_v12 = vmax.f32 %v780_v60, %v781_v2 }
  0xa2   : > { %v626_v57 = vadd.f32 %v610_v53, %v526_v54 }
  0xa3   : > { %v554_v51 = vpop.permute.xlu1 %553  ;;  %2531 = vset.pattern.permute.xlu1 %v2557_v1  ;;  %v525_v1 = vmul.f32 %v2724_v32, %v448_v26  ;;  %v783_v21 = vrot.slane %v782_v12, 2 }
  0xa4   : > { %v2747_v52 = vpop.permute.xlu0 %497  ;;  %v611_v8 = vmul.f32 %v2721_v29, %v554_v51 }
  0xa5   : > { %v625_v4 = vadd.f32 %v609_v62, %v525_v1  ;;  %v784_v35 = vmax.f32 %v782_v12, %v783_v21 }
  0xa6   : > { %v627_v16 = vadd.f32 %v611_v8, %v527_v7 }
  0xa7   : > { %v785_v54 = vrot.slane %v784_v35, 1 }
  0xa8   : > { %v650_v55 = vpop.permute.xlu1 %649  ;;  %v2751_v56 = vpop.permute.xlu0 %507 }
  0xa9   : > { %v710_v58 = vmul.f32 %v2729_v37, %v650_v55 }
  0xab   : > { %v726_v59 = vadd.f32 %v710_v58, %v626_v57 }
  0xac   : > { %v2755_v61 = vpop.permute.xlu0 %517 }
  0xad   : > { %v749_v63 = vadd.f32 %v2736_v42, %v726_v59  ;;  %v463_v0 = vpop.permute.xlu1 %462 }
  0xae   : > { %v528_v26 = vmul.f32 %v2724_v32, %v463_v0 }
  0xaf   : > { %v765_v3 = vmax.f32 %v749_v63, 0.0 }
  0xb1   : > { %v794_v5 = vsel %vm779_vm0, %v765_v3, -inf  ;;  %v646_v6 = vpop.permute.xlu0 %645 }
  0xb2   : > { %v795_v9 = vrot.slane %v794_v5, 4  ;;  %v709_v10 = vmul.f32 %v2729_v37, %v646_v6  ;;  %v558_v11 = vpop.permute.xlu1 %557 }
  0xb3   : > { %v612_v24 = vmul.f32 %v2721_v29, %v558_v11 }
  0xb4   : > { %v725_v13 = vadd.f32 %v709_v10, %v625_v4  ;;  %v796_v17 = vmax.f32 %v794_v5, %v795_v9  ;;  %v786_v4 = vmax.f32 %v784_v35, %v785_v54 }
  0xb5   : > { %v654_v15 = vpop.permute.xlu0 %653  ;;  %v628_v39 = vadd.f32 %v612_v24, %v528_v26 }
  0xb6   : > { %v748_v18 = vadd.f32 %v2736_v42, %v725_v13  ;;  %v711_v19 = vmul.f32 %v2729_v37, %v654_v15  ;;  %v562_v20 = vpop.permute.xlu1 %561  ;;  %v797_v30 = vrot.slane %v796_v17, 2 }
  0xb7   : > { %v613_v22 = vmul.f32 %v2721_v29, %v562_v20 }
  0xb8   : > { %v764_v23 = vmax.f32 %v748_v18, 0.0  ;;  %v727_v25 = vadd.f32 %v711_v19, %v627_v16  ;;  %v798_v45 = vmax.f32 %v796_v17, %v797_v30  ;;  %v531_v17 = vmul.f32 %v2724_v32, %v2740_v47 }
  0xb9   : > { %v629_v27 = vadd.f32 %v613_v22, %v529_v14  ;;  %v662_v28 = vpop.permute.xlu0 %661 }
  0xba   : > { %v787_v31 = vsel %vm779_vm0, %v764_v23, -inf  ;;  %v750_v33 = vadd.f32 %v2736_v42, %v727_v25  ;;  %v713_v34 = vmul.f32 %v2729_v37, %v662_v28  ;;  %2371 = vmatmul.mubr.msk.f32.vlgmr.msra.gmra.mxu0 %vm779_vm0, %v764_v23  ;;  %v799_v62 = vrot.slane %v798_v45, 1 }
  0xbb   : > { %v788_v36 = vrot.slane %v787_v31, 4  ;;  %v658_v38 = vpop.permute.xlu1 %657  ;;  %2373 = vmatprep.mubr.msk.f32.mxu0 %vm779_vm0, %v765_v3 }
  0xbc   : > { %v766_v40 = vmax.f32 %v750_v33, 0.0  ;;  %v729_v41 = vadd.f32 %v713_v34, %v629_v27  ;;  %v712_v43 = vmul.f32 %v2729_v37, %v658_v38  ;;  %v800_v11 = vmax.f32 %v798_v45, %v799_v62 }
  0xbd   : > { %v789_v44 = vmax.f32 %v787_v31, %v788_v36  ;;  %v670_v16 = vpop.permute.xlu0 %669 }
  0xbe   : > { %v801_v46 = vsel %vm779_vm0, %v766_v40, -inf  ;;  %v752_v48 = vadd.f32 %v2736_v42, %v729_v41  ;;  %v728_v49 = vadd.f32 %v712_v43, %v628_v39  ;;  %2374 = vmatmul.mubr.msk.f32.gmra.mxu0 %vm779_vm0, %v766_v40  ;;  %v715_v24 = vmul.f32 %v2729_v37, %v670_v16 }
  0xbf   : > { %v790_v51 = vrot.slane %v789_v44, 2  ;;  %v802_v53 = vrot.slane %v801_v46, 4 }
  0xc0   : > { %v768_v55 = vmax.f32 %v752_v48, 0.0  ;;  %v751_v57 = vadd.f32 %v2736_v42, %v728_v49  ;;  %v473_v58 = vpop.permute.xlu1 %472 }
  0xc1   : > { %v791_v59 = vmax.f32 %v789_v44, %v790_v51  ;;  %v803_v60 = vmax.f32 %v801_v46, %v802_v53  ;;  %v530_v47 = vmul.f32 %v2724_v32, %v473_v58  ;;  %v678_v62 = vpop.permute.xlu0 %677 }
  0xc2   : > { %v815_v63 = vsel %vm779_vm0, %v768_v55, -inf  ;;  %v767_v0 = vmax.f32 %v751_v57, 0.0 }
  0xc3   : > { %v792_v1 = vrot.slane %v791_v59, 1  ;;  %v804_v2 = vrot.slane %v803_v60, 2  ;;  %v816_v3 = vrot.slane %v815_v63, 4 }
  0xc4   : > { %v808_v5 = vsel %vm779_vm0, %v767_v0, -inf  ;;  %2376 = vmatprep.mubr.msk.f32.mxu0 %vm779_vm0, %v767_v0 }
  0xc5   : > { %v793_v6 = vmax.f32 %v791_v59, %v792_v1  ;;  %v805_v7 = vmax.f32 %v803_v60, %v804_v2  ;;  %v817_v8 = vmax.f32 %v815_v63, %v816_v3  ;;  %v809_v9 = vrot.slane %v808_v5, 4  ;;  %v566_v10 = vpop.permute.xlu1 %565  ;;  %2377 = vmatmul.mubr.msk.f32.gmra.mxu0 %vm779_vm0, %v768_v55 }
  0xc6   : > { %v614_v26 = vmul.f32 %v2721_v29, %v566_v10  ;;  %v533_v63 = vmul.f32 %v2724_v32, %v2744_v50 }
  0xc7   : > { %v1894_v12 = vsel %vm1893_vm1, %v793_v6, %v786_v4  ;;  %v806_v13 = vrot.slane %v805_v7, 1  ;;  %v818_v14 = vrot.slane %v817_v8, 2  ;;  %v810_v15 = vmax.f32 %v808_v5, %v809_v9 }
  0xc8   : > { %v1896_v18 = vsel %vm1895_vm2, %v800_v11, %v1894_v12  ;;  %v630_v36 = vadd.f32 %v614_v26, %v530_v47  ;;  %v717_v4 = vmul.f32 %v2729_v37, %v678_v62 }
  0xc9   : > { %v807_v19 = vmax.f32 %v805_v7, %v806_v13  ;;  %v819_v20 = vmax.f32 %v817_v8, %v818_v14  ;;  %v811_v21 = vrot.slane %v810_v15, 2  ;;  %v570_v22 = vpop.permute.xlu1 %569 }
  0xca   : > { %v615_v23 = vmul.f32 %v2721_v29, %v570_v22 }
  0xcb   : > { %v812_v25 = vmax.f32 %v810_v15, %v811_v21  ;;  %v1898_v27 = vsel %vm1897_vm3, %v807_v19, %v1896_v18  ;;  %v820_v28 = vrot.slane %v819_v20, 1 }
  0xcc   : > { %v631_v30 = vadd.f32 %v615_v23, %v531_v17 }
  0xcd   : > { %v813_v31 = vrot.slane %v812_v25, 1  ;;  %v821_v39 = vmax.f32 %v819_v20, %v820_v28 }
  0xce   : > { %v731_v33 = vadd.f32 %v715_v24, %v631_v30  ;;  %v666_v34 = vpop.permute.xlu1 %665 }
  0xcf   : > { %v814_v35 = vmax.f32 %v812_v25, %v813_v31  ;;  %v714_v38 = vmul.f32 %v2729_v37, %v666_v34 }
  0xd0   : > { %v754_v40 = vadd.f32 %v2736_v42, %v731_v33  ;;  %v686_v33 = vpop.permute.xlu0 %685 }
  0xd1   : > { %v730_v41 = vadd.f32 %v714_v38, %v630_v36  ;;  %v1900_v43 = vsel %vm1899_vm4, %v814_v35, %v1898_v27  ;;  %v535_v38 = vmul.f32 %v2724_v32, %v2747_v52 }
  0xd2   : > { %v770_v44 = vmax.f32 %v754_v40, 0.0  ;;  %v1902_v45 = vsel %vm1901_vm5, %v821_v39, %v1900_v43  ;;  %v719_v40 = vmul.f32 %v2729_v37, %v686_v33 }
  0xd3   : > { %v753_v46 = vadd.f32 %v2736_v42, %v730_v41  ;;  %v483_v48 = vpop.permute.xlu1 %482 }
  0xd4   : > { %v829_v49 = vsel %vm779_vm0, %v770_v44, -inf  ;;  %v532_v10 = vmul.f32 %v2724_v32, %v483_v48 }
  0xd5   : > { %v830_v51 = vrot.slane %v829_v49, 4  ;;  %v769_v53 = vmax.f32 %v753_v46, 0.0 }
  0xd7   : > { %v831_v54 = vmax.f32 %v829_v49, %v830_v51  ;;  %v822_v55 = vsel %vm779_vm0, %v769_v53, -inf  ;;  %2379 = vmatprep.mubr.msk.f32.mxu0 %vm779_vm0, %v769_v53 }
  0xd8   : > { %v823_v57 = vrot.slane %v822_v55, 4  ;;  %v574_v58 = vpop.permute.xlu1 %573  ;;  %2380 = vmatmul.mubr.msk.f32.gmra.mxu0 %vm779_vm0, %v770_v44 }
  0xd9   : > { %v832_v59 = vrot.slane %v831_v54, 2  ;;  %v616_v6 = vmul.f32 %v2721_v29, %v574_v58 }
  0xda   : > { %v824_v60 = vmax.f32 %v822_v55, %v823_v57 }
  0xdb   : > { %v833_v0 = vmax.f32 %v831_v54, %v832_v59  ;;  %v632_v13 = vadd.f32 %v616_v6, %v532_v10 }
  0xdc   : > { %v825_v1 = vrot.slane %v824_v60, 2  ;;  %v578_v2 = vpop.permute.xlu1 %577 }
  0xdd   : > { %v617_v3 = vmul.f32 %v2721_v29, %v578_v2  ;;  %v834_v8 = vrot.slane %v833_v0, 1 }
  0xde   : > { %v826_v5 = vmax.f32 %v824_v60, %v825_v1 }
  0xdf   : > { %v633_v7 = vadd.f32 %v617_v3, %v533_v63  ;;  %v835_v16 = vmax.f32 %v833_v0, %v834_v8  ;;  %v1227_v0 = vld [vmem:[%s3141_s5 + $0x18] sm:$0xff] }
  0xe0   : > { %v827_v9 = vrot.slane %v826_v5, 1  ;;  %2394 = vmatprep.subr.mxu1 %v1227_v0 }
  0xe1   : > { %v733_v11 = vadd.f32 %v717_v4, %v633_v7  ;;  %v674_v12 = vpop.permute.xlu1 %673 }
  0xe2   : > { %v716_v50 = vmul.f32 %v2729_v37, %v674_v12  ;;  %v828_v14 = vmax.f32 %v826_v5, %v827_v9 }
  0xe3   : > { %v756_v15 = vadd.f32 %v2736_v42, %v733_v11 }
  0xe4   : > { %v732_v17 = vadd.f32 %v716_v50, %v632_v13  ;;  %v1904_v18 = vsel %vm1903_vm6, %v828_v14, %v1902_v45  ;;  %v537_v13 = vmul.f32 %v2724_v32, %v2751_v56 }
  0xe5   : > { %v772_v19 = vmax.f32 %v756_v15, 0.0  ;;  %v2812_v20 = vsel %vm1905_vm7, %v835_v16, %v1904_v18  ;;  %v694_v15 = vpop.permute.xlu0 %693 }
  0xe6   : > { %v755_v21 = vadd.f32 %v2736_v42, %v732_v17  ;;  %v493_v22 = vpop.permute.xlu1 %492  ;;  %v721_v18 = vmul.f32 %v2729_v37, %v694_v15 }
  0xe7   : > { %v843_v23 = vsel %vm779_vm0, %v772_v19, -inf  ;;  %v534_v48 = vmul.f32 %v2724_v32, %v493_v22 }
  0xe8   : > { %v844_v24 = vrot.slane %v843_v23, 4  ;;  %v771_v25 = vmax.f32 %v755_v21, 0.0 }
  0xea   : > { %v845_v26 = vmax.f32 %v843_v23, %v844_v24  ;;  %v836_v27 = vsel %vm779_vm0, %v771_v25, -inf  ;;  %2382 = vmatprep.mubr.msk.f32.mxu0 %vm779_vm0, %v771_v25 }
  0xeb   : > { %v837_v28 = vrot.slane %v836_v27, 4  ;;  %v582_v30 = vpop.permute.xlu1 %581  ;;  %2383 = vmatmul.mubr.msk.f32.gmra.mxu0 %vm779_vm0, %v772_v19 }
  0xec   : > { %v846_v31 = vrot.slane %v845_v26, 2  ;;  %v618_v44 = vmul.f32 %v2721_v29, %v582_v30 }
  0xed   : > { %v838_v47 = vmax.f32 %v836_v27, %v837_v28 }
  0xee   : > { %v847_v34 = vmax.f32 %v845_v26, %v846_v31  ;;  %v634_v55 = vadd.f32 %v618_v44, %v534_v48  ;;  %v1225_v48 = vld [vmem:[%s3141_s5 + $0x8] sm:$0xff] }
  0xef   : > { %v839_v35 = vrot.slane %v838_v47, 2  ;;  %v586_v36 = vpop.permute.xlu1 %585 }
  0xf0   : > { %v619_v39 = vmul.f32 %v2721_v29, %v586_v36  ;;  %v848_v41 = vrot.slane %v847_v34, 1 }
  0xf1   : > { %v840_v43 = vmax.f32 %v838_v47, %v839_v35 }
  0xf2   : > { %v635_v45 = vadd.f32 %v619_v39, %v535_v38  ;;  %v849_v53 = vmax.f32 %v847_v34, %v848_v41 }
  0xf3   : > { %v841_v46 = vrot.slane %v840_v43, 1 }
  0xf4   : > { %v735_v49 = vadd.f32 %v719_v40, %v635_v45  ;;  %v682_v51 = vpop.permute.xlu1 %681 }
  0xf5   : > { %v842_v54 = vmax.f32 %v840_v43, %v841_v46  ;;  %v718_v57 = vmul.f32 %v2729_v37, %v682_v51  ;;  %v1226_v43 = vld [vmem:[%s3141_s5 + $0x10] sm:$0xff] }
  0xf6   : > { %v758_v52 = vadd.f32 %v2736_v42, %v735_v49 }
  0xf7   : > { %v1907_v58 = vsel %vm1893_vm1, %v849_v53, %v842_v54  ;;  %v734_v59 = vadd.f32 %v718_v57, %v634_v55  ;;  %v1224_v53 = vld [vmem:[%s3141_s5] sm:$0xff]  ;;  %v702_v54 = vpop.permute.xlu0 %701 }
  0xf8   : > { %v774_v60 = vmax.f32 %v758_v52, 0.0  ;;  %v539_v52 = vmul.f32 %v2724_v32, %v2755_v61 }
  0xf9   : > { %v757_v62 = vadd.f32 %v2736_v42, %v734_v59  ;;  %v503_v63 = vpop.permute.xlu1 %502 }
  0xfa   : > { %v857_v1 = vsel %vm779_vm0, %v774_v60, -inf  ;;  %v536_v22 = vmul.f32 %v2724_v32, %v503_v63 }
  0xfb   : > { %v858_v2 = vrot.slane %v857_v1, 4  ;;  %v773_v3 = vmax.f32 %v757_v62, 0.0  ;;  %v723_v62 = vmul.f32 %v2729_v37, %v702_v54 }
  0xfd   : > { %v859_v4 = vmax.f32 %v857_v1, %v858_v2  ;;  %v850_v5 = vsel %vm779_vm0, %v773_v3, -inf  ;;  %2385 = vmatprep.mubr.msk.f32.mxu0 %vm779_vm0, %v773_v3 }
  0xfe   : > { %v851_v6 = vrot.slane %v850_v5, 4  ;;  %v590_v7 = vpop.permute.xlu1 %589  ;;  %2386 = vmatmul.mubr.msk.f32.gmra.mxu0 %vm779_vm0, %v774_v60 }
  0xff   : > { %v860_v8 = vrot.slane %v859_v4, 2  ;;  %v620_v16 = vmul.f32 %v2721_v29, %v590_v7 }
 0x100   : > { %v852_v9 = vmax.f32 %v850_v5, %v851_v6 }
 0x101   : > { %v861_v10 = vmax.f32 %v859_v4, %v860_v8  ;;  %v636_v26 = vadd.f32 %v620_v16, %v536_v22 }
 0x102   : > { %v853_v11 = vrot.slane %v852_v9, 2  ;;  %v594_v12 = vpop.permute.xlu1 %593 }
 0x103   : > { %v621_v50 = vmul.f32 %v2721_v29, %v594_v12  ;;  %v862_v17 = vrot.slane %v861_v10, 1 }
 0x104   : > { %v854_v14 = vmax.f32 %v852_v9, %v853_v11 }
 0x105   : > { %v637_v19 = vadd.f32 %v621_v50, %v537_v13  ;;  %v863_v56 = vmax.f32 %v861_v10, %v862_v17 }
 0x106   : > { %v855_v21 = vrot.slane %v854_v14, 1 }
 0x107   : > { %v737_v23 = vadd.f32 %v721_v18, %v637_v19  ;;  %v690_v24 = vpop.permute.xlu1 %689 }
 0x108   : > { %v856_v25 = vmax.f32 %v854_v14, %v855_v21  ;;  %v720_v27 = vmul.f32 %v2729_v37, %v690_v24 }
 0x109   : > { %v760_v28 = vadd.f32 %v2736_v42, %v737_v23 }
 0x10a   : > { %v736_v30 = vadd.f32 %v720_v27, %v636_v26  ;;  %v1908_v31 = vsel %vm1895_vm2, %v856_v25, %v1907_v58  ;;  %v2882_v27 = vld [vmem:[%s3140_s4] ss:$0 sm:$0xff] }
 0x10b   : > { %v776_v47 = vmax.f32 %v760_v28, 0.0  ;;  %v1909_v33 = vsel %vm1897_vm3, %v863_v56, %v1908_v31 }
 0x10c   : > { %v513_v34 = vpop.permute.xlu1 %512  ;;  %v759_v35 = vadd.f32 %v2736_v42, %v736_v30 }
 0x10d   : > { %v871_v36 = vsel %vm779_vm0, %v776_v47, -inf  ;;  %v538_v1 = vmul.f32 %v2724_v32, %v513_v34 }
 0x10e   : > { %v872_v38 = vrot.slane %v871_v36, 4  ;;  %v775_v39 = vmax.f32 %v759_v35, 0.0 }
 0x110   : > { %v873_v40 = vmax.f32 %v871_v36, %v872_v38  ;;  %v864_v41 = vsel %vm779_vm0, %v775_v39, -inf  ;;  %2388 = vmatprep.mubr.msk.f32.mxu1 %vm779_vm0, %v775_v39 }
 0x111   : > { %v865_v44 = vrot.slane %v864_v41, 4  ;;  %v598_v45 = vpop.permute.xlu1 %597  ;;  %2389 = vmatmul.mubr.msk.f32.vlgmr.msra.gmra.mxu1 %vm779_vm0, %v776_v47 }
 0x112   : > { %v874_v46 = vrot.slane %v873_v40, 2  ;;  %2395 = vmatpush3.msra.mxu1 %v1227_v0  ;;  %v622_v60 = vmul.f32 %v2721_v29, %v598_v45 }
 0x113   : > { %v866_v49 = vmax.f32 %v864_v41, %v865_v44  ;;  %2396 = vmatprep.subr.mxu1 %v1226_v43 }
 0x114   : > { %v875_v51 = vmax.f32 %v873_v40, %v874_v46  ;;  %2397 = vmatpush3.msra.mxu1 %v1226_v43  ;;  %v638_v6 = vadd.f32 %v622_v60, %v538_v1 }
 0x115   : > { %v867_v55 = vrot.slane %v866_v49, 2  ;;  %v602_v57 = vpop.permute.xlu1 %601  ;;  %2398 = vmatprep.subr.mxu1 %v1225_v48 }
 0x116   : > { %v623_v58 = vmul.f32 %v2721_v29, %v602_v57  ;;  %2399 = vmatpush3.msra.mxu1 %v1225_v48  ;;  %v876_v63 = vrot.slane %v875_v51, 1 }
 0x117   : > { %v868_v59 = vmax.f32 %v866_v49, %v867_v55  ;;  %2400 = vmatprep.subr.mxu1 %v1224_v53 }
 0x118   : > { %v639_v0 = vadd.f32 %v623_v58, %v539_v52  ;;  %2401 = vmatpush3.msra.mxu1 %v1224_v53  ;;  %v877_v8 = vmax.f32 %v875_v51, %v876_v63 }
 0x119   : > { %v869_v2 = vrot.slane %v868_v59, 1 }
 0x11a   : > { %v739_v3 = vadd.f32 %v723_v62, %v639_v0  ;;  %v698_v4 = vpop.permute.xlu1 %697 }
 0x11b   : > { %v870_v5 = vmax.f32 %v868_v59, %v869_v2  ;;  %v722_v61 = vmul.f32 %v2729_v37, %v698_v4 }
 0x11c   : > { %v762_v7 = vadd.f32 %v2736_v42, %v739_v3 }
 0x11d   : > { %v738_v9 = vadd.f32 %v722_v61, %v638_v6  ;;  %v1910_v29 = vsel %vm1899_vm4, %v870_v5, %v1909_v33 }
 0x11e   : > { %v778_v10 = vmax.f32 %v762_v7, 0.0  ;;  %v1911_v11 = vsel %vm1901_vm5, %v877_v8, %v1910_v29 }
 0x11f   : > { %v761_v12 = vadd.f32 %v2736_v42, %v738_v9 }
 0x120   : > { %v885_v32 = vsel %vm779_vm0, %v778_v10, -inf }
 0x121   : > { %v886_v13 = vrot.slane %v885_v32, 4  ;;  %v777_v50 = vmax.f32 %v761_v12, 0.0 }
 0x123   : > { %v887_v14 = vmax.f32 %v885_v32, %v886_v13  ;;  %v878_v15 = vsel %vm779_vm0, %v777_v50, -inf  ;;  %2391 = vmatprep.mubr.msk.f32.mxu1 %vm779_vm0, %v777_v50 }
 0x124   : > { %v879_v37 = vrot.slane %v878_v15, 4  ;;  %2392 = vmatmul.mubr.msk.f32.gmra.mxu1 %vm779_vm0, %v778_v10 }
 0x125   : > { %v888_v16 = vrot.slane %v887_v14, 2 }
 0x126   : > { %v880_v17 = vmax.f32 %v878_v15, %v879_v37 }
 0x127   : > { %v889_v18 = vmax.f32 %v887_v14, %v888_v16 }
 0x128   : > { %v881_v19 = vrot.slane %v880_v17, 2 }
 0x129   : > { %v890_v22 = vrot.slane %v889_v18, 1 }
 0x12a   : > { %v882_v21 = vmax.f32 %v880_v17, %v881_v19 }
 0x12b   : > { %v891_v24 = vmax.f32 %v889_v18, %v890_v22 }
 0x12c   : > { %v883_v23 = vrot.slane %v882_v21, 1 }
 0x12e   : > { %v884_v42 = vmax.f32 %v882_v21, %v883_v23 }
 0x130   : > { %v1912_v25 = vsel %vm1903_vm6, %v884_v42, %v1911_v11 }
 0x131   : > { %v2877_v26 = vsel %vm1905_vm7, %v891_v24, %v1912_v25 }
 0x17a   : > { %v2372_v56 = vpop.f32.mrf.mxu0 }
 0x17b   : > { %v1023_v28 = vadd.f32 %v2372_v56, %v2882_v27 }
 0x17c   : > { %v1017_v30 = vpop.f32.mrf.mxu0 }
 0x17d   : > { %v1018_v31 = vadd.f32 %v2882_v27, %v1017_v30  ;;  %v1097_v34 = vmax.f32 %v1023_v28, 0.0 }
 0x17e   : > { %v2375_v47 = vpop.f32.mrf.mxu0 }
 0x17f   : > { %v1096_v33 = vmax.f32 %v1018_v31, 0.0  ;;  %v1033_v35 = vadd.f32 %v2375_v47, %v2882_v27  ;;  %v1119_v46 = vsel %vm779_vm0, %v1097_v34, -inf }
 0x180   : > { %v1027_v36 = vpop.f32.mrf.mxu0  ;;  %v1120_v54 = vrot.slane %v1119_v46, 4 }
 0x181   : > { %v1028_v38 = vadd.f32 %v2882_v27, %v1027_v36  ;;  %2402 = vmatprep.mubr.msk.f32.mxu1 %vm779_vm0, %v1096_v33  ;;  %v1099_v40 = vmax.f32 %v1033_v35, 0.0  ;;  %v1112_v44 = vsel %vm779_vm0, %v1096_v33, -inf  ;;  %v1563_v35 = vld [vmem:[%s3143_s7 + $0x30] sm:$0xff] }
 0x182   : > { %2403 = vmatmul.mubr.msk.f32.vlgmr.msra.gmra.mxu1 %vm779_vm0, %v1097_v34  ;;  %v1113_v51 = vrot.slane %v1112_v44, 4  ;;  %v1121_v60 = vmax.f32 %v1119_v46, %v1120_v54  ;;  %v1564_v34 = vld [vmem:[%s3143_s7 + $0x38] sm:$0xff] }
 0x183   : > { %v1098_v39 = vmax.f32 %v1028_v38, 0.0  ;;  %v1133_v58 = vsel %vm779_vm0, %v1099_v40, -inf  ;;  %2426 = vmatprep.subr.mxu0 %v1564_v34 }
 0x184   : > { %v1114_v59 = vmax.f32 %v1112_v44, %v1113_v51  ;;  %v1134_v0 = vrot.slane %v1133_v58, 4  ;;  %v1122_v3 = vrot.slane %v1121_v60, 2  ;;  %2427 = vmatpush3.msra.mxu0 %v1564_v34 }
 0x185   : > { %v2378_v41 = vpop.f32.mrf.mxu0  ;;  %2405 = vmatprep.mubr.msk.f32.mxu1 %vm779_vm0, %v1098_v39  ;;  %v1126_v48 = vsel %vm779_vm0, %v1098_v39, -inf  ;;  %2428 = vmatprep.subr.mxu0 %v1563_v35 }
 0x186   : > { %2406 = vmatmul.mubr.msk.f32.gmra.mxu1 %vm779_vm0, %v1099_v40  ;;  %v1043_v45 = vadd.f32 %v2378_v41, %v2882_v27  ;;  %v1127_v55 = vrot.slane %v1126_v48, 4  ;;  %v1115_v2 = vrot.slane %v1114_v59, 2  ;;  %v1135_v6 = vmax.f32 %v1133_v58, %v1134_v0  ;;  %v1562_v40 = vld [vmem:[%s3143_s7 + $0x28] sm:$0xff]  ;;  %2429 = vmatpush3.msra.mxu0 %v1563_v35 }
 0x187   : > { %v1037_v43 = vpop.f32.mrf.mxu0  ;;  %v1123_v8 = vmax.f32 %v1121_v60, %v1122_v3  ;;  %2430 = vmatprep.subr.mxu0 %v1562_v40 }
 0x188   : > { %v1038_v49 = vadd.f32 %v2882_v27, %v1037_v43  ;;  %v1101_v57 = vmax.f32 %v1043_v45, 0.0  ;;  %v1128_v62 = vmax.f32 %v1126_v48, %v1127_v55  ;;  %v1116_v7 = vmax.f32 %v1114_v59, %v1115_v2  ;;  %2431 = vmatpush3.msra.mxu0 %v1562_v40 }
 0x189   : > { %v1136_v11 = vrot.slane %v1135_v6, 2  ;;  %v1124_v37 = vrot.slane %v1123_v8, 1 }
 0x18a   : > { %v1100_v53 = vmax.f32 %v1038_v49, 0.0  ;;  %v1147_v1 = vsel %vm779_vm0, %v1101_v57, -inf  ;;  %v1129_v4 = vrot.slane %v1128_v62, 2  ;;  %v1117_v50 = vrot.slane %v1116_v7, 1  ;;  %v1561_v49 = vld [vmem:[%s3143_s7 + $0x20] sm:$0xff] }
 0x18b   : > { %v1148_v61 = vrot.slane %v1147_v1, 4  ;;  %v1137_v18 = vmax.f32 %v1135_v6, %v1136_v11  ;;  %v1125_v31 = vmax.f32 %v1123_v8, %v1124_v37  ;;  %2432 = vmatprep.subr.mxu0 %v1561_v49  ;;  %v1559_v11 = vld [vmem:[%s3143_s7 + $0x10] sm:$0xff] }
 0x18c   : > { %v1140_v52 = vsel %vm779_vm0, %v1100_v53, -inf  ;;  %2408 = vmatprep.mubr.msk.f32.mxu1 %vm779_vm0, %v1100_v53  ;;  %v1130_v9 = vmax.f32 %v1128_v62, %v1129_v4  ;;  %v1118_v42 = vmax.f32 %v1116_v7, %v1117_v50  ;;  %2433 = vmatpush3.msra.mxu0 %v1561_v49 }
 0x18d   : > { %2409 = vmatmul.mubr.msk.f32.gmra.mxu1 %vm779_vm0, %v1101_v57  ;;  %v1141_v63 = vrot.slane %v1140_v52, 4  ;;  %v1149_v12 = vmax.f32 %v1147_v1, %v1148_v61  ;;  %v1138_v47 = vrot.slane %v1137_v18, 1 }
 0x18e   : > { %v1131_v16 = vrot.slane %v1130_v9, 1  ;;  %v1932_v39 = vsel %vm1893_vm1, %v1125_v31, %v1118_v42 }
 0x18f   : > { %v1142_v5 = vmax.f32 %v1140_v52, %v1141_v63  ;;  %v1150_v19 = vrot.slane %v1149_v12, 2  ;;  %v1139_v46 = vmax.f32 %v1137_v18, %v1138_v47 }
 0x190   : > { %v1132_v25 = vmax.f32 %v1130_v9, %v1131_v16 }
 0x191   : > { %v1143_v29 = vrot.slane %v1142_v5, 2  ;;  %v1151_v33 = vmax.f32 %v1149_v12, %v1150_v19  ;;  %v1558_v12 = vld [vmem:[%s3143_s7 + $0x8] sm:$0xff] }
 0x192   : > { %v1933_v41 = vsel %vm1895_vm2, %v1132_v25, %v1932_v39 }
 0x193   : > { %v1144_v17 = vmax.f32 %v1142_v5, %v1143_v29  ;;  %v1152_v48 = vrot.slane %v1151_v33, 1  ;;  %v1934_v54 = vsel %vm1897_vm3, %v1139_v46, %v1933_v41  ;;  %v1560_v29 = vld [vmem:[%s3143_s7 + $0x18] sm:$0xff] }
 0x194   : > { %2434 = vmatprep.subr.mxu0 %v1560_v29 }
 0x195   : > { %v1145_v56 = vrot.slane %v1144_v17, 1  ;;  %v1153_v52 = vmax.f32 %v1151_v33, %v1152_v48  ;;  %2435 = vmatpush3.msra.mxu0 %v1560_v29 }
 0x196   : > { %2436 = vmatprep.subr.mxu0 %v1559_v11 }
 0x197   : > { %v1146_v43 = vmax.f32 %v1144_v17, %v1145_v56  ;;  %2437 = vmatpush3.msra.mxu0 %v1559_v11 }
 0x198   : > { %v2381_v10 = vpop.f32.mrf.mxu0  ;;  %2438 = vmatprep.subr.mxu0 %v1558_v12 }
 0x199   : > { %v1053_v32 = vadd.f32 %v2381_v10, %v2882_v27  ;;  %v1935_v57 = vsel %vm1899_vm4, %v1146_v43, %v1934_v54  ;;  %2439 = vmatpush3.msra.mxu0 %v1558_v12 }
 0x19a   : > { %v1047_v13 = vpop.f32.mrf.mxu0  ;;  %v1936_v62 = vsel %vm1901_vm5, %v1153_v52, %v1935_v57 }
 0x19b   : > { %v1103_v14 = vmax.f32 %v1053_v32, 0.0  ;;  %v1048_v15 = vadd.f32 %v2882_v27, %v1047_v13  ;;  %v1557_v32 = vld [vmem:[%s3143_s7] sm:$0xff] }
 0x19c   : > { %2440 = vmatprep.subr.mxu0 %v1557_v32 }
 0x19d   : > { %v1161_v21 = vsel %vm779_vm0, %v1103_v14, -inf  ;;  %v1102_v22 = vmax.f32 %v1048_v15, 0.0  ;;  %2441 = vmatpush3.msra.mxu0 %v1557_v32 }
 0x19e   : > { %v1162_v23 = vrot.slane %v1161_v21, 4 }
 0x19f   : > { %v1154_v24 = vsel %vm779_vm0, %v1102_v22, -inf  ;;  %2411 = vmatprep.mubr.msk.f32.mxu1 %vm779_vm0, %v1102_v22 }
 0x1a0   : > { %v1163_v28 = vmax.f32 %v1161_v21, %v1162_v23  ;;  %v1155_v30 = vrot.slane %v1154_v24, 4  ;;  %2412 = vmatmul.mubr.msk.f32.gmra.mxu1 %vm779_vm0, %v1103_v14 }
 0x1a2   : > { %v1164_v36 = vrot.slane %v1163_v28, 2  ;;  %v1156_v38 = vmax.f32 %v1154_v24, %v1155_v30 }
 0x1a4   : > { %v1165_v44 = vmax.f32 %v1163_v28, %v1164_v36  ;;  %v1157_v45 = vrot.slane %v1156_v38, 2 }
 0x1a6   : > { %v1158_v51 = vmax.f32 %v1156_v38, %v1157_v45  ;;  %v1166_v53 = vrot.slane %v1165_v44, 1 }
 0x1a8   : > { %v1159_v55 = vrot.slane %v1158_v51, 1  ;;  %v1167_v60 = vmax.f32 %v1165_v44, %v1166_v53 }
 0x1aa   : > { %v1160_v58 = vmax.f32 %v1158_v51, %v1159_v55 }
 0x1ab   : > { %v2384_v59 = vpop.f32.mrf.mxu0 }
 0x1ac   : > { %v1937_v63 = vsel %vm1903_vm6, %v1160_v58, %v1936_v62  ;;  %v1063_v0 = vadd.f32 %v2384_v59, %v2882_v27 }
 0x1ad   : > { %v1057_v1 = vpop.f32.mrf.mxu0  ;;  %v1938_v2 = vsel %vm1905_vm7, %v1167_v60, %v1937_v63 }
 0x1ae   : > { %v1058_v3 = vadd.f32 %v2882_v27, %v1057_v1  ;;  %1946 = vrot.lane.b32.xlu0 %v1938_v2, %s2559_s25  ;;  %v1105_v5 = vmax.f32 %v1063_v0, 0.0 }
 0x1b0   : > { %v1104_v4 = vmax.f32 %v1058_v3, 0.0  ;;  %v1175_v16 = vsel %vm779_vm0, %v1105_v5, -inf }
 0x1b1   : > { %v1176_v22 = vrot.slane %v1175_v16, 4 }
 0x1b2   : > { %2414 = vmatprep.mubr.msk.f32.mxu1 %vm779_vm0, %v1104_v4  ;;  %v1168_v15 = vsel %vm779_vm0, %v1104_v4, -inf }
 0x1b3   : > { %2415 = vmatmul.mubr.msk.f32.gmra.mxu1 %vm779_vm0, %v1105_v5  ;;  %v1169_v19 = vrot.slane %v1168_v15, 4  ;;  %v1177_v56 = vmax.f32 %v1175_v16, %v1176_v22 }
 0x1b5   : > { %v1170_v25 = vmax.f32 %v1168_v15, %v1169_v19  ;;  %v1178_v34 = vrot.slane %v1177_v56, 2 }
 0x1b7   : > { %v1171_v33 = vrot.slane %v1170_v25, 2  ;;  %v1179_v41 = vmax.f32 %v1177_v56, %v1178_v34 }
 0x1b9   : > { %v1172_v40 = vmax.f32 %v1170_v25, %v1171_v33  ;;  %v1180_v57 = vrot.slane %v1179_v41, 1 }
 0x1bb   : > { %v1173_v53 = vrot.slane %v1172_v40, 1 }
 0x1bd   : > { %v1174_v1 = vmax.f32 %v1172_v40, %v1173_v53 }
 0x1be   : > { %v2387_v6 = vpop.f32.mrf.mxu0 }
 0x1bf   : > { %v1073_v61 = vadd.f32 %v2387_v6, %v2882_v27 }
 0x1c0   : > { %v1067_v7 = vpop.f32.mrf.mxu0 }
 0x1c1   : > { %v1068_v8 = vadd.f32 %v2882_v27, %v1067_v7  ;;  %v1107_v10 = vmax.f32 %v1073_v61, 0.0 }
 0x1c3   : > { %v1106_v9 = vmax.f32 %v1068_v8, 0.0  ;;  %v1189_v24 = vsel %vm779_vm0, %v1107_v10, -inf }
 0x1c4   : > { %v1190_v31 = vrot.slane %v1189_v24, 4 }
 0x1c5   : > { %2417 = vmatprep.mubr.msk.f32.mxu1 %vm779_vm0, %v1106_v9  ;;  %v1182_v17 = vsel %vm779_vm0, %v1106_v9, -inf }
 0x1c6   : > { %2418 = vmatmul.mubr.msk.f32.gmra.mxu1 %vm779_vm0, %v1107_v10  ;;  %v1183_v23 = vrot.slane %v1182_v17, 4  ;;  %v1191_v38 = vmax.f32 %v1189_v24, %v1190_v31  ;;  %v2975_v24 = vld [vmem:[%s3142_s6] ss:$0 sm:$0xff] }
 0x1c8   : > { %v1184_v28 = vmax.f32 %v1182_v17, %v1183_v23  ;;  %v1192_v46 = vrot.slane %v1191_v38, 2 }
 0x1ca   : > { %v1185_v35 = vrot.slane %v1184_v28, 2  ;;  %v1193_v59 = vmax.f32 %v1191_v38, %v1192_v46 }
 0x1cc   : > { %v1186_v43 = vmax.f32 %v1184_v28, %v1185_v35  ;;  %v1194_v61 = vrot.slane %v1193_v59, 1 }
 0x1ce   : > { %v1187_v52 = vrot.slane %v1186_v43, 1 }
 0x1d0   : > { %v1188_v3 = vmax.f32 %v1186_v43, %v1187_v52 }
 0x1d1   : > { %v2390_v13 = vpop.f32.mrf.mxu1 }
 0x1d2   : > { %v1083_v50 = vadd.f32 %v2390_v13, %v2882_v27  ;;  %v1195_v13 = vmax.f32 %v1193_v59, %v1194_v61 }
 0x1d3   : > { %v1077_v14 = vpop.f32.mrf.mxu1 }
 0x1d4   : > { %v1078_v37 = vadd.f32 %v2882_v27, %v1077_v14  ;;  %v1109_v21 = vmax.f32 %v1083_v50, 0.0 }
 0x1d6   : > { %v1108_v18 = vmax.f32 %v1078_v37, 0.0  ;;  %v1203_v47 = vsel %vm779_vm0, %v1109_v21, -inf }
 0x1d7   : > { %v1204_v39 = vrot.slane %v1203_v47, 4 }
 0x1d8   : > { %2420 = vmatprep.mubr.msk.f32.mxu1 %vm779_vm0, %v1108_v18  ;;  %v1196_v42 = vsel %vm779_vm0, %v1108_v18, -inf }
 0x1d9   : > { %2421 = vmatmul.mubr.msk.f32.gmra.mxu1 %vm779_vm0, %v1109_v21  ;;  %v1197_v30 = vrot.slane %v1196_v42, 4  ;;  %v1205_v48 = vmax.f32 %v1203_v47, %v1204_v39 }
 0x1db   : > { %v1198_v36 = vmax.f32 %v1196_v42, %v1197_v30  ;;  %v1206_v60 = vrot.slane %v1205_v48, 2 }
 0x1dd   : > { %v1199_v44 = vrot.slane %v1198_v36, 2  ;;  %v1207_v7 = vmax.f32 %v1205_v48, %v1206_v60 }
 0x1df   : > { %v1200_v58 = vmax.f32 %v1198_v36, %v1199_v44  ;;  %v1208_v50 = vrot.slane %v1207_v7, 1 }
 0x1e1   : > { %v1201_v4 = vrot.slane %v1200_v58, 1  ;;  %v1209_v18 = vmax.f32 %v1207_v7, %v1208_v50 }
 0x1e3   : > { %v1202_v11 = vmax.f32 %v1200_v58, %v1201_v4 }
 0x1e4   : > { %v2393_v45 = vpop.f32.mrf.mxu1 }
 0x1e5   : > { %v1093_v49 = vadd.f32 %v2393_v45, %v2882_v27 }
 0x1e6   : > { %v1087_v51 = vpop.f32.mrf.mxu1 }
 0x1e7   : > { %v1111_v54 = vmax.f32 %v1093_v49, 0.0  ;;  %v1088_v55 = vadd.f32 %v2882_v27, %v1087_v51  ;;  %v1181_v27 = vmax.f32 %v1179_v41, %v1180_v57 }
 0x1e9   : > { %v1217_v62 = vsel %vm779_vm0, %v1111_v54, -inf  ;;  %v1110_v63 = vmax.f32 %v1088_v55, 0.0  ;;  %v1939_v29 = vsel %vm1893_vm1, %v1181_v27, %v1174_v1 }
 0x1ea   : > { %v1218_v0 = vrot.slane %v1217_v62, 4  ;;  %v1940_v10 = vsel %vm1895_vm2, %v1188_v3, %v1939_v29 }
 0x1eb   : > { %v1210_v2 = vsel %vm779_vm0, %v1110_v63, -inf  ;;  %2423 = vmatprep.mubr.msk.f32.mxu1 %vm779_vm0, %v1110_v63  ;;  %v1941_v37 = vsel %vm1897_vm3, %v1195_v13, %v1940_v10 }
 0x1ec   : > { %v1219_v5 = vmax.f32 %v1217_v62, %v1218_v0  ;;  %v1211_v6 = vrot.slane %v1210_v2, 4  ;;  %2424 = vmatmul.mubr.msk.f32.gmra.mxu1 %vm779_vm0, %v1111_v54  ;;  %v1942_v17 = vsel %vm1899_vm4, %v1202_v11, %v1941_v37 }
 0x1ed   : > { %v1943_v22 = vsel %vm1901_vm5, %v1209_v18, %v1942_v17 }
 0x1ee   : > { %v1220_v8 = vrot.slane %v1219_v5, 2  ;;  %v1212_v9 = vmax.f32 %v1210_v2, %v1211_v6 }
 0x1f0   : > { %v1221_v12 = vmax.f32 %v1219_v5, %v1220_v8  ;;  %v1213_v32 = vrot.slane %v1212_v9, 2 }
 0x1f2   : > { %v1214_v14 = vmax.f32 %v1212_v9, %v1213_v32  ;;  %v1222_v15 = vrot.slane %v1221_v12, 1 }
 0x1f4   : > { %v1215_v16 = vrot.slane %v1214_v14, 1  ;;  %v1223_v21 = vmax.f32 %v1221_v12, %v1222_v15 }
 0x1f6   : > { %v1216_v19 = vmax.f32 %v1214_v14, %v1215_v16 }
 0x1f8   : > { %v1944_v23 = vsel %vm1903_vm6, %v1216_v19, %v1943_v22 }
 0x1f9   : > { %v1945_v42 = vsel %vm1905_vm7, %v1223_v21, %v1944_v23 }
 0x1fa   : > { %1948 = vrot.lane.b32.xlu1 %v1945_v42, %s2559_s25 }
 0x242   : > { %v2404_v25 = vpop.f32.mrf.mxu1 }
 0x243   : > { %v1355_v56 = vadd.f32 %v2404_v25, %v2975_v24 }
 0x244   : > { %v1349_v28 = vpop.f32.mrf.mxu1 }
 0x245   : > { %v1429_v30 = vmax.f32 %v1355_v56, 0.0  ;;  %v1350_v31 = vadd.f32 %v2975_v24, %v1349_v28 }
 0x246   : > { %v2407_v47 = vpop.f32.mrf.mxu1 }
 0x247   : > { %v1452_v33 = vsel %vm1444_vm8, %v1429_v30, -inf  ;;  %v1428_v34 = vmax.f32 %v1350_v31, 0.0  ;;  %v1365_v35 = vadd.f32 %v2407_v47, %v2975_v24 }
 0x248   : > { %v1453_v36 = vrot.slane %v1452_v33, 4  ;;  %v1359_v38 = vpop.f32.mrf.mxu1 }
 0x249   : > { %v1445_v39 = vsel %vm1444_vm8, %v1428_v34, -inf  ;;  %v1431_v40 = vmax.f32 %v1365_v35, 0.0  ;;  %v1360_v41 = vadd.f32 %v2975_v24, %v1359_v38  ;;  %2442 = vmatprep.mubr.msk.f32.mxu0 %vm1444_vm8, %v1428_v34 }
 0x24a   : > { %v1454_v43 = vmax.f32 %v1452_v33, %v1453_v36  ;;  %v1446_v44 = vrot.slane %v1445_v39, 4  ;;  %2443 = vmatmul.mubr.msk.f32.vlgmr.msra.gmra.mxu0 %vm1444_vm8, %v1429_v30 }
 0x24b   : > { %v1466_v45 = vsel %vm1444_vm8, %v1431_v40, -inf  ;;  %v1430_v46 = vmax.f32 %v1360_v41, 0.0 }
 0x24c   : > { %v1455_v48 = vrot.slane %v1454_v43, 2  ;;  %v1447_v49 = vmax.f32 %v1445_v39, %v1446_v44  ;;  %v1467_v51 = vrot.slane %v1466_v45, 4 }
 0x24d   : > { %v1459_v53 = vsel %vm1444_vm8, %v1430_v46, -inf  ;;  %2445 = vmatprep.mubr.msk.f32.mxu0 %vm1444_vm8, %v1430_v46  ;;  %v2410_v58 = vpop.f32.mrf.mxu1 }
 0x24e   : > { %v1456_v54 = vmax.f32 %v1454_v43, %v1455_v48  ;;  %v1448_v55 = vrot.slane %v1447_v49, 2  ;;  %v1468_v57 = vmax.f32 %v1466_v45, %v1467_v51  ;;  %v1460_v52 = vrot.slane %v1459_v53, 4  ;;  %2446 = vmatmul.mubr.msk.f32.gmra.mxu0 %vm1444_vm8, %v1431_v40 }
 0x24f   : > { %v1375_v59 = vadd.f32 %v2410_v58, %v2975_v24  ;;  %v1369_v1 = vpop.f32.mrf.mxu1 }
 0x250   : > { %v1457_v60 = vrot.slane %v1456_v54, 1  ;;  %v1449_v62 = vmax.f32 %v1447_v49, %v1448_v55  ;;  %v1469_v63 = vrot.slane %v1468_v57, 2  ;;  %v1461_v0 = vmax.f32 %v1459_v53, %v1460_v52 }
 0x251   : > { %v1433_v2 = vmax.f32 %v1375_v59, 0.0  ;;  %v1370_v3 = vadd.f32 %v2975_v24, %v1369_v1 }
 0x252   : > { %v1450_v4 = vrot.slane %v1449_v62, 1  ;;  %v1470_v5 = vmax.f32 %v1468_v57, %v1469_v63  ;;  %v1462_v6 = vrot.slane %v1461_v0, 2  ;;  %v1458_v7 = vmax.f32 %v1456_v54, %v1457_v60 }
 0x253   : > { %v1480_v27 = vsel %vm1444_vm8, %v1433_v2, -inf  ;;  %v1432_v61 = vmax.f32 %v1370_v3, 0.0 }
 0x254   : > { %v1451_v8 = vmax.f32 %v1449_v62, %v1450_v4  ;;  %v1463_v9 = vmax.f32 %v1461_v0, %v1462_v6  ;;  %v1481_v29 = vrot.slane %v1480_v27, 4  ;;  %v1471_v10 = vrot.slane %v1470_v5, 1 }
 0x255   : > { %v1473_v11 = vsel %vm1444_vm8, %v1432_v61, -inf  ;;  %2448 = vmatprep.mubr.msk.f32.mxu0 %vm1444_vm8, %v1432_v61 }
 0x256   : > { %v1968_v12 = vsel %vm1893_vm1, %v1458_v7, %v1451_v8  ;;  %v1464_v32 = vrot.slane %v1463_v9, 1  ;;  %v1482_v13 = vmax.f32 %v1480_v27, %v1481_v29  ;;  %2449 = vmatmul.mubr.msk.f32.gmra.mxu0 %vm1444_vm8, %v1433_v2  ;;  %v1474_v50 = vrot.slane %v1473_v11, 4 }
 0x257   : > { %v1472_v37 = vmax.f32 %v1470_v5, %v1471_v10 }
 0x258   : > { %v1465_v14 = vmax.f32 %v1463_v9, %v1464_v32  ;;  %v1483_v15 = vrot.slane %v1482_v13, 2  ;;  %v1475_v16 = vmax.f32 %v1473_v11, %v1474_v50 }
 0x25a   : > { %v1969_v17 = vsel %vm1895_vm2, %v1465_v14, %v1968_v12  ;;  %v1484_v18 = vmax.f32 %v1482_v13, %v1483_v15  ;;  %v1476_v19 = vrot.slane %v1475_v16, 2 }
 0x25b   : > { %v1970_v21 = vsel %vm1897_vm3, %v1472_v37, %v1969_v17 }
 0x25c   : > { %v1477_v22 = vmax.f32 %v1475_v16, %v1476_v19  ;;  %v1485_v23 = vrot.slane %v1484_v18, 1 }
 0x25e   : > { %v1478_v42 = vrot.slane %v1477_v22, 1  ;;  %v1486_v30 = vmax.f32 %v1484_v18, %v1485_v23 }
 0x260   : > { %v2413_v25 = vpop.f32.mrf.mxu1  ;;  %v1479_v56 = vmax.f32 %v1477_v22, %v1478_v42 }
 0x261   : > { %v1385_v28 = vadd.f32 %v2413_v25, %v2975_v24 }
 0x262   : > { %v1379_v31 = vpop.f32.mrf.mxu1  ;;  %v1971_v34 = vsel %vm1899_vm4, %v1479_v56, %v1970_v21 }
 0x263   : > { %v1435_v47 = vmax.f32 %v1385_v28, 0.0  ;;  %v1380_v33 = vadd.f32 %v2975_v24, %v1379_v31  ;;  %v1972_v35 = vsel %vm1901_vm5, %v1486_v30, %v1971_v34 }
 0x265   : > { %v1494_v36 = vsel %vm1444_vm8, %v1435_v47, -inf  ;;  %v1434_v38 = vmax.f32 %v1380_v33, 0.0 }
 0x266   : > { %v1495_v39 = vrot.slane %v1494_v36, 4 }
 0x267   : > { %v1487_v40 = vsel %vm1444_vm8, %v1434_v38, -inf  ;;  %2451 = vmatprep.mubr.msk.f32.mxu0 %vm1444_vm8, %v1434_v38 }
 0x268   : > { %v1496_v41 = vmax.f32 %v1494_v36, %v1495_v39  ;;  %v1488_v43 = vrot.slane %v1487_v40, 4  ;;  %2452 = vmatmul.mubr.msk.f32.gmra.mxu0 %vm1444_vm8, %v1435_v47 }
 0x26a   : > { %v1497_v44 = vrot.slane %v1496_v41, 2  ;;  %v1489_v45 = vmax.f32 %v1487_v40, %v1488_v43 }
 0x26c   : > { %v1498_v46 = vmax.f32 %v1496_v41, %v1497_v44  ;;  %v1490_v48 = vrot.slane %v1489_v45, 2 }
 0x26e   : > { %v1491_v49 = vmax.f32 %v1489_v45, %v1490_v48  ;;  %v1499_v51 = vrot.slane %v1498_v46, 1 }
 0x270   : > { %v1492_v53 = vrot.slane %v1491_v49, 1  ;;  %v1500_v57 = vmax.f32 %v1498_v46, %v1499_v51 }
 0x272   : > { %v1493_v54 = vmax.f32 %v1491_v49, %v1492_v53 }
 0x273   : > { %v2416_v55 = vpop.f32.mrf.mxu1 }
 0x274   : > { %v1973_v52 = vsel %vm1903_vm6, %v1493_v54, %v1972_v35  ;;  %v1395_v58 = vadd.f32 %v2416_v55, %v2975_v24 }
 0x275   : > { %v1389_v59 = vpop.f32.mrf.mxu1  ;;  %v3009_v60 = vsel %vm1905_vm7, %v1500_v57, %v1973_v52 }
 0x276   : > { %v1390_v62 = vadd.f32 %v2975_v24, %v1389_v59  ;;  %v1437_v0 = vmax.f32 %v1395_v58, 0.0 }
 0x278   : > { %v1436_v63 = vmax.f32 %v1390_v62, 0.0  ;;  %v1508_v29 = vsel %vm1444_vm8, %v1437_v0, -inf }
 0x279   : > { %v1509_v13 = vrot.slane %v1508_v29, 4 }
 0x27a   : > { %2454 = vmatprep.mubr.msk.f32.mxu0 %vm1444_vm8, %v1436_v63  ;;  %v1501_v8 = vsel %vm1444_vm8, %v1436_v63, -inf }
 0x27b   : > { %2455 = vmatmul.mubr.msk.f32.gmra.mxu0 %vm1444_vm8, %v1437_v0  ;;  %v1502_v12 = vrot.slane %v1501_v8, 4  ;;  %v1510_v16 = vmax.f32 %v1508_v29, %v1509_v13 }
 0x27d   : > { %v1503_v37 = vmax.f32 %v1501_v8, %v1502_v12  ;;  %v1511_v23 = vrot.slane %v1510_v16, 2 }
 0x27f   : > { %v1504_v22 = vrot.slane %v1503_v37, 2  ;;  %v1512_v31 = vmax.f32 %v1510_v16, %v1511_v23  ;;  %v2032_v16 = vld [vmem:[%s3146_s10] sm:$0xff] }
 0x280   : > { %2038 = vperm.xlu0 %2530, %v2032_v16  }
 0x281   : > { %v1505_v30 = vmax.f32 %v1503_v37, %v1504_v22  ;;  %v1513_v44 = vrot.slane %v1512_v31, 1  ;;  %v2025_v37 = vld [vmem:[%s3145_s9 + $0x8] sm:$0xff] }
 0x282   : > { %2120 = vmatprep.mubr.f32.mxu1 %v2025_v37 }
 0x283   : > { %v1506_v40 = vrot.slane %v1505_v30, 1 }
 0x285   : > { %v1507_v55 = vmax.f32 %v1505_v30, %v1506_v40 }
 0x286   : > { %v2419_v1 = vpop.f32.mrf.mxu1 }
 0x287   : > { %v1405_v2 = vadd.f32 %v2419_v1, %v2975_v24 }
 0x288   : > { %v1399_v3 = vpop.f32.mrf.mxu1 }
 0x289   : > { %v1400_v4 = vadd.f32 %v2975_v24, %v1399_v3  ;;  %v1439_v6 = vmax.f32 %v1405_v2, 0.0 }
 0x28b   : > { %v1438_v5 = vmax.f32 %v1400_v4, 0.0  ;;  %v1522_v15 = vsel %vm1444_vm8, %v1439_v6, -inf }
 0x28c   : > { %v1523_v19 = vrot.slane %v1522_v15, 4 }
 0x28d   : > { %2457 = vmatprep.mubr.msk.f32.mxu0 %vm1444_vm8, %v1438_v5  ;;  %v1515_v10 = vsel %vm1444_vm8, %v1438_v5, -inf }
 0x28e   : > { %2458 = vmatmul.mubr.msk.f32.gmra.mxu0 %vm1444_vm8, %v1439_v6  ;;  %v1516_v50 = vrot.slane %v1515_v10, 4  ;;  %v1524_v56 = vmax.f32 %v1522_v15, %v1523_v19 }
 0x290   : > { %v1517_v17 = vmax.f32 %v1515_v10, %v1516_v50  ;;  %v1525_v35 = vrot.slane %v1524_v56, 2 }
 0x292   : > { %v1518_v42 = vrot.slane %v1517_v17, 2  ;;  %v1526_v48 = vmax.f32 %v1524_v56, %v1525_v35 }
 0x294   : > { %v1519_v47 = vmax.f32 %v1517_v17, %v1518_v42  ;;  %v1527_v63 = vrot.slane %v1526_v48, 1  ;;  %v2033_v17 = vld [vmem:[%s3146_s10 + $0x8] sm:$0xff] }
 0x296   : > { %v1520_v45 = vrot.slane %v1519_v47, 1 }
 0x298   : > { %v1521_v52 = vmax.f32 %v1519_v47, %v1520_v45 }
 0x299   : > { %v2422_v27 = vpop.f32.mrf.mxu1 }
 0x29a   : > { %v1415_v61 = vadd.f32 %v2422_v27, %v2975_v24 }
 0x29b   : > { %v1409_v7 = vpop.f32.mrf.mxu1 }
 0x29c   : > { %v1410_v9 = vadd.f32 %v2975_v24, %v1409_v7  ;;  %v1441_v32 = vmax.f32 %v1415_v61, 0.0  ;;  %v1528_v61 = vmax.f32 %v1526_v48, %v1527_v63 }
 0x29e   : > { %v1440_v11 = vmax.f32 %v1410_v9, 0.0  ;;  %v1536_v21 = vsel %vm1444_vm8, %v1441_v32, -inf }
 0x29f   : > { %v1537_v28 = vrot.slane %v1536_v21, 4 }
 0x2a0   : > { %2460 = vmatprep.mubr.msk.f32.mxu0 %vm1444_vm8, %v1440_v11  ;;  %v1529_v14 = vsel %vm1444_vm8, %v1440_v11, -inf }
 0x2a1   : > { %2461 = vmatmul.mubr.msk.f32.gmra.mxu0 %vm1444_vm8, %v1441_v32  ;;  %v1530_v18 = vrot.slane %v1529_v14, 4  ;;  %v1538_v36 = vmax.f32 %v1536_v21, %v1537_v28 }
 0x2a3   : > { %v1531_v25 = vmax.f32 %v1529_v14, %v1530_v18  ;;  %v1539_v49 = vrot.slane %v1538_v36, 2  ;;  %v2035_v18 = vld [vmem:[%s3146_s10 + $0x18] sm:$0xff] }
 0x2a4   : > { %2053 = vperm.xlu0 %2530, %v2035_v18  }
 0x2a5   : > { %v1532_v33 = vrot.slane %v1531_v25, 2  ;;  %v1540_v0 = vmax.f32 %v1538_v36, %v1539_v49 }
 0x2a7   : > { %v1533_v46 = vmax.f32 %v1531_v25, %v1532_v33  ;;  %v1541_v7 = vrot.slane %v1540_v0, 1 }
 0x2a9   : > { %v1534_v58 = vrot.slane %v1533_v46, 1  ;;  %v1542_v12 = vmax.f32 %v1540_v0, %v1541_v7 }
 0x2ab   : > { %v1535_v5 = vmax.f32 %v1533_v46, %v1534_v58 }
 0x2ac   : > { %v2425_v34 = vpop.f32.mrf.mxu1 }
 0x2ad   : > { %v1425_v38 = vadd.f32 %v2425_v34, %v2975_v24 }
 0x2ae   : > { %v1419_v39 = vpop.f32.mrf.mxu1 }
 0x2af   : > { %v1443_v41 = vmax.f32 %v1425_v38, 0.0  ;;  %v1420_v43 = vadd.f32 %v2975_v24, %v1419_v39  ;;  %v1514_v24 = vmax.f32 %v1512_v31, %v1513_v44  ;;  %v3060_v31 = vld [vmem:[%s3144_s8] ss:$0 sm:$0xff] }
 0x2b1   : > { %v1550_v51 = vsel %vm1444_vm8, %v1443_v41, -inf  ;;  %v1442_v53 = vmax.f32 %v1420_v43, 0.0  ;;  %v1975_v3 = vsel %vm1893_vm1, %v1514_v24, %v1507_v55 }
 0x2b2   : > { %v1551_v54 = vrot.slane %v1550_v51, 4  ;;  %v1976_v4 = vsel %vm1895_vm2, %v1521_v52, %v1975_v3 }
 0x2b3   : > { %v1543_v57 = vsel %vm1444_vm8, %v1442_v53, -inf  ;;  %2463 = vmatprep.mubr.msk.f32.mxu0 %vm1444_vm8, %v1442_v53  ;;  %v1977_v29 = vsel %vm1897_vm3, %v1528_v61, %v1976_v4 }
 0x2b4   : > { %v1552_v59 = vmax.f32 %v1550_v51, %v1551_v54  ;;  %v1544_v62 = vrot.slane %v1543_v57, 4  ;;  %2464 = vmatmul.mubr.msk.f32.gmra.mxu0 %vm1444_vm8, %v1443_v41  ;;  %v1978_v11 = vsel %vm1899_vm4, %v1535_v5, %v1977_v29 }
 0x2b5   : > { %v1979_v50 = vsel %vm1901_vm5, %v1542_v12, %v1978_v11 }
 0x2b6   : > { %v1553_v1 = vrot.slane %v1552_v59, 2  ;;  %v1545_v2 = vmax.f32 %v1543_v57, %v1544_v62 }
 0x2b8   : > { %v1554_v6 = vmax.f32 %v1552_v59, %v1553_v1  ;;  %v1546_v27 = vrot.slane %v1545_v2, 2 }
 0x2ba   : > { %v1547_v8 = vmax.f32 %v1545_v2, %v1546_v27  ;;  %v1555_v9 = vrot.slane %v1554_v6, 1 }
 0x2bc   : > { %v1548_v10 = vrot.slane %v1547_v8, 1  ;;  %v1556_v13 = vmax.f32 %v1554_v6, %v1555_v9 }
 0x2be   : > { %v1549_v32 = vmax.f32 %v1547_v8, %v1548_v10 }
 0x2c0   : > { %v1980_v14 = vsel %vm1903_vm6, %v1549_v32, %v1979_v50 }
 0x2c1   : > { %v1981_v15 = vsel %vm1905_vm7, %v1556_v13, %v1980_v14 }
 0x2c2   : > { %1984 = vrot.lane.b32.xlu1 %v1981_v15, %s2560_s21 }
 0x2c6   : > { %1982 = vrot.lane.b32.xlu1 %v3009_v60, %s2560_s21  ;;  %v2034_v60 = vld [vmem:[%s3146_s10 + $0x10] sm:$0xff]  ;;  %s422_s21 = scalar_lea.vmem %s3147_s11, %s2297_s14 }
 0x2ca   : > { %2043 = vperm.xlu1 %2531, %v2033_v17  }
 0x2ce   : > { %2048 = vperm.xlu1 %2531, %v2034_v60  }
 0x30a   : > { %v2444_v19 = vpop.f32.mrf.mxu0 }
 0x30b   : > { %v1692_v33 = vadd.f32 %v2444_v19, %v3060_v31 }
 0x30c   : > { %v1686_v21 = vpop.f32.mrf.mxu0 }
 0x30d   : > { %v1687_v35 = vadd.f32 %v3060_v31, %v1686_v21  ;;  %v1766_v36 = vmax.f32 %v1692_v33, 0.0 }
 0x30e   : > { %v2447_v22 = vpop.f32.mrf.mxu0 }
 0x30f   : > { %v1765_v39 = vmax.f32 %v1687_v35, 0.0  ;;  %v1787_v43 = vrot.slane %v1766_v36, 4  ;;  %v1702_v48 = vadd.f32 %v2447_v22, %v3060_v31 }
 0x310   : > { %v1696_v23 = vpop.f32.mrf.mxu0 }
 0x311   : > { %v1697_v40 = vadd.f32 %v3060_v31, %v1696_v23  ;;  %v1781_v46 = vrot.slane %v1765_v39, 4  ;;  %v1788_v55 = vmax.f32 %v1766_v36, %v1787_v43  ;;  %v1768_v63 = vmax.f32 %v1702_v48, 0.0 }
 0x313   : > { %v1767_v49 = vmax.f32 %v1697_v40, 0.0  ;;  %v1782_v24 = vmax.f32 %v1765_v39, %v1781_v46  ;;  %v1789_v5 = vrot.slane %v1788_v55, 2  ;;  %v1799_v29 = vrot.slane %v1768_v63, 4 }
 0x315   : > { %v1793_v0 = vrot.slane %v1767_v49, 4  ;;  %v1783_v9 = vrot.slane %v1782_v24, 2  ;;  %v1790_v50 = vmax.f32 %v1788_v55, %v1789_v5  ;;  %v1800_v19 = vmax.f32 %v1768_v63, %v1799_v29 }
 0x316   : > { %v2450_v42 = vpop.f32.mrf.mxu0 }
 0x317   : > { %v1712_v1 = vadd.f32 %v2450_v42, %v3060_v31  ;;  %v1794_v10 = vmax.f32 %v1767_v49, %v1793_v0  ;;  %v1784_v60 = vmax.f32 %v1782_v24, %v1783_v9  ;;  %v1801_v39 = vrot.slane %v1800_v19, 2 }
 0x318   : > { %v1706_v25 = vpop.f32.mrf.mxu0 }
 0x319   : > { %v1707_v53 = vadd.f32 %v3060_v31, %v1706_v25  ;;  %v1770_v11 = vmax.f32 %v1712_v1, 0.0  ;;  %v1795_v21 = vrot.slane %v1794_v10, 2 }
 0x31b   : > { %v1769_v2 = vmax.f32 %v1707_v53, 0.0  ;;  %v1811_v22 = vrot.slane %v1770_v11, 4 }
 0x31d   : > { %v1805_v12 = vrot.slane %v1769_v2, 4  ;;  %v1812_v40 = vmax.f32 %v1770_v11, %v1811_v22 }
 0x31f   : > { %v1806_v23 = vmax.f32 %v1769_v2, %v1805_v12 }
 0x328   : > { %v2453_v56 = vpop.f32.mrf.mxu0 }
 0x329   : > { %v1722_v37 = vadd.f32 %v2453_v56, %v3060_v31  ;;  %v1796_v56 = vmax.f32 %v1794_v10, %v1795_v21 }
 0x32a   : > { %v1716_v28 = vpop.f32.mrf.mxu0 }
 0x32b   : > { %v1717_v3 = vadd.f32 %v3060_v31, %v1716_v28  ;;  %v1791_v28 = vrot.slane %v1790_v50, 1  ;;  %v1772_v33 = vmax.f32 %v1722_v37, 0.0 }
 0x32d   : > { %v1771_v32 = vmax.f32 %v1717_v3, 0.0  ;;  %v1823_v49 = vrot.slane %v1772_v33, 4 }
 0x32f   : > { %v1817_v42 = vrot.slane %v1771_v32, 4 }
 0x331   : > { %v1818_v43 = vmax.f32 %v1771_v32, %v1817_v42 }
 0x333   : > { %v1819_v63 = vrot.slane %v1818_v43, 2 }
 0x335   : > { %v1820_v32 = vmax.f32 %v1818_v43, %v1819_v63 }
 0x33b   : > { %v2456_v30 = vpop.f32.mrf.mxu0 }
 0x33c   : > { %v1732_v45 = vadd.f32 %v2456_v30, %v3060_v31 }
 0x33d   : > { %v1726_v47 = vpop.f32.mrf.mxu0 }
 0x33e   : > { %v1727_v41 = vadd.f32 %v3060_v31, %v1726_v47  ;;  %v1774_v58 = vmax.f32 %v1732_v45, 0.0  ;;  %v1792_v45 = vmax.f32 %v1790_v50, %v1791_v28 }
 0x340   : > { %v1773_v54 = vmax.f32 %v1727_v41, 0.0  ;;  %v1835_v61 = vrot.slane %v1774_v58, 4  ;;  %v1807_v41 = vrot.slane %v1806_v23, 2 }
 0x342   : > { %v1829_v4 = vrot.slane %v1773_v54, 4  ;;  %v1836_v16 = vmax.f32 %v1774_v58, %v1835_v61  ;;  %v1797_v58 = vrot.slane %v1796_v56, 1  ;;  %v1808_v24 = vmax.f32 %v1806_v23, %v1807_v41 }
 0x344   : > { %v1830_v13 = vmax.f32 %v1773_v54, %v1829_v4  ;;  %v1798_v9 = vmax.f32 %v1796_v56, %v1797_v58  ;;  %v1809_v12 = vrot.slane %v1808_v24, 1 }
 0x346   : > { %v1831_v25 = vrot.slane %v1830_v13, 2  ;;  %v1810_v42 = vmax.f32 %v1808_v24, %v1809_v12 }
 0x34e   : > { %v2459_v34 = vpop.f32.mrf.mxu0 }
 0x34f   : > { %v1742_v59 = vadd.f32 %v2459_v34, %v3060_v31  ;;  %v1837_v34 = vrot.slane %v1836_v16, 2 }
 0x350   : > { %v1736_v38 = vpop.f32.mrf.mxu0 }
 0x351   : > { %v1737_v44 = vadd.f32 %v3060_v31, %v1736_v38  ;;  %v1776_v7 = vmax.f32 %v1742_v59, 0.0  ;;  %v1785_v38 = vrot.slane %v1784_v60, 1 }
 0x353   : > { %v1775_v57 = vmax.f32 %v1737_v44, 0.0  ;;  %v1847_v17 = vrot.slane %v1776_v7, 4  ;;  %v1832_v44 = vmax.f32 %v1830_v13, %v1831_v25  ;;  %v1821_v25 = vrot.slane %v1820_v32, 1 }
 0x355   : > { %v1841_v6 = vrot.slane %v1775_v57, 4  ;;  %v1848_v35 = vmax.f32 %v1776_v7, %v1847_v17  ;;  %v1833_v0 = vrot.slane %v1832_v44, 1 }
 0x357   : > { %v1842_v14 = vmax.f32 %v1775_v57, %v1841_v6  ;;  %v1849_v53 = vrot.slane %v1848_v35, 2  ;;  %v1786_v57 = vmax.f32 %v1784_v60, %v1785_v38  ;;  %v1824_v6 = vmax.f32 %v1772_v33, %v1823_v49 }
 0x358   : > { %v1834_v13 = vmax.f32 %v1832_v44, %v1833_v0 }
 0x359   : > { %v1843_v30 = vrot.slane %v1842_v14, 2  ;;  %v1850_v61 = vmax.f32 %v1848_v35, %v1849_v53  ;;  %v2004_v60 = vsel %vm1893_vm1, %v1792_v45, %v1786_v57  ;;  %v1949_v35 = vpop.permute.xlu1 %1948  ;;  %v1822_v45 = vmax.f32 %v1820_v32, %v1821_v25 }
 0x35a   : > { %v2005_v23 = vsel %vm1895_vm2, %v1798_v9, %v2004_v60  ;;  %v2021_v63 = vsel %vm779_vm0, %v2877_v26, %v1949_v35  ;;  %v2024_v26 = vld [vmem:[%s3145_s9] sm:$0xff]  ;;  %v2031_v9 = vld [vmem:[%s3145_s9 + $0x38] sm:$0xff] }
 0x35b   : > { %v1844_v46 = vmax.f32 %v1842_v14, %v1843_v30 }
 0x35d   : > { %v1845_v2 = vrot.slane %v1844_v46, 1 }
 0x35f   : > { %v1846_v50 = vmax.f32 %v1844_v46, %v1845_v2  ;;  %v1947_v2 = vpop.permute.xlu0 %1946 }
 0x361   : > { %v2462_v51 = vpop.f32.mrf.mxu0 }
 0x362   : > { %v1752_v8 = vadd.f32 %v2462_v51, %v3060_v31  ;;  %v1838_v51 = vmax.f32 %v1836_v16, %v1837_v34  ;;  %v1825_v16 = vrot.slane %v1824_v6, 2 }
 0x363   : > { %v1746_v52 = vpop.f32.mrf.mxu0 }
 0x364   : > { %v1747_v62 = vadd.f32 %v3060_v31, %v1746_v52  ;;  %v1778_v18 = vmax.f32 %v1752_v8, 0.0  ;;  %v1802_v52 = vmax.f32 %v1800_v19, %v1801_v39  ;;  %v1826_v38 = vmax.f32 %v1824_v6, %v1825_v16 }
 0x365   : > { %v2020_v6 = vsel %vm779_vm0, %v2812_v20, %v1947_v2  ;;  %v2029_v20 = vld [vmem:[%s3145_s9 + $0x28] sm:$0xff] }
 0x366   : > { %v1777_v27 = vmax.f32 %v1747_v62, 0.0  ;;  %v1859_v36 = vrot.slane %v1778_v18, 4  ;;  %v1813_v62 = vrot.slane %v1812_v40, 2  ;;  %v1803_v8 = vrot.slane %v1802_v52, 1 }
 0x367   : > { %v1827_v53 = vrot.slane %v1826_v38, 1 }
 0x368   : > { %v1853_v15 = vrot.slane %v1777_v27, 4  ;;  %v1860_v54 = vmax.f32 %v1778_v18, %v1859_v36  ;;  %v1814_v11 = vmax.f32 %v1812_v40, %v1813_v62  ;;  %v1851_v18 = vrot.slane %v1850_v61, 1 }
 0x369   : > { %v1804_v19 = vmax.f32 %v1802_v52, %v1803_v8  ;;  %v2028_v8 = vld [vmem:[%s3145_s9 + $0x20] sm:$0xff] }
 0x36a   : > { %v1854_v47 = vmax.f32 %v1777_v27, %v1853_v15  ;;  %v1839_v27 = vrot.slane %v1838_v51, 1  ;;  %v1861_v7 = vrot.slane %v1860_v54, 2  ;;  %v1815_v36 = vrot.slane %v1814_v11, 1 }
 0x36b   : > { %v1852_v39 = vmax.f32 %v1850_v61, %v1851_v18  ;;  %v2006_v44 = vsel %vm1897_vm3, %v1804_v19, %v2005_v23  ;;  %v2027_v61 = vld [vmem:[%s3145_s9 + $0x18] sm:$0xff] }
 0x36c   : > { %v1855_v48 = vrot.slane %v1854_v47, 2  ;;  %v1840_v17 = vmax.f32 %v1838_v51, %v1839_v27  ;;  %v2007_v49 = vsel %vm1899_vm4, %v1810_v42, %v2006_v44  ;;  %v1816_v51 = vmax.f32 %v1814_v11, %v1815_v36 }
 0x36e   : > { %v1856_v3 = vmax.f32 %v1854_v47, %v1855_v48  ;;  %v2011_v28 = vsel %vm1893_vm1, %v1840_v17, %v1834_v13 }
 0x36f   : > { %v2012_v30 = vsel %vm1895_vm2, %v1846_v50, %v2011_v28 }
 0x370   : > { %v1857_v14 = vrot.slane %v1856_v3, 1  ;;  %v2013_v43 = vsel %vm1897_vm3, %v1852_v39, %v2012_v30 }
 0x372   : > { %v1858_v47 = vmax.f32 %v1856_v3, %v1857_v14 }
 0x374   : > { %v2465_v55 = vpop.f32.mrf.mxu0  ;;  %v2014_v48 = vsel %vm1899_vm4, %v1858_v47, %v2013_v43 }
 0x375   : > { %v1762_v59 = vadd.f32 %v2465_v55, %v3060_v31 }
 0x376   : > { %v1756_v1 = vpop.f32.mrf.mxu0 }
 0x377   : > { %v1780_v4 = vmax.f32 %v1762_v59, 0.0  ;;  %v1757_v5 = vadd.f32 %v3060_v31, %v1756_v1  ;;  %v1862_v31 = vmax.f32 %v1860_v54, %v1861_v7  ;;  %v1985_v54 = vpop.permute.xlu1 %1984  ;;  %v2008_v59 = vsel %vm1901_vm5, %v1816_v51, %v2007_v49  ;;  %v2026_v7 = vld [vmem:[%s3145_s9 + $0x10] sm:$0xff] }
 0x378   : > { %v2009_v24 = vsel %vm1903_vm6, %v1822_v45, %v2008_v59  ;;  %v1828_v1 = vmax.f32 %v1826_v38, %v1827_v53  ;;  %v2023_v3 = vsel %vm1444_vm8, %v2021_v63, %v1985_v54 }
 0x379   : > { %v1871_v29 = vrot.slane %v1780_v4, 4  ;;  %v1779_v10 = vmax.f32 %v1757_v5, 0.0  ;;  %v1863_v56 = vrot.slane %v1862_v31, 1 }
 0x37a   : > { %v2010_v5 = vsel %vm1905_vm7, %v1828_v1, %v2009_v24 }
 0x37b   : > { %v1872_v15 = vmax.f32 %v1780_v4, %v1871_v29  ;;  %v1865_v37 = vrot.slane %v1779_v10, 4  ;;  %v1864_v55 = vmax.f32 %v1862_v31, %v1863_v56  ;;  %v1983_v4 = vpop.permute.xlu1 %1982  ;;  %v2030_v29 = vld [vmem:[%s3145_s9 + $0x30] sm:$0xff] }
 0x37c   : > { %v2022_v27 = vsel %vm1444_vm8, %v2020_v6, %v1983_v4 }
 0x37d   : > { %v1873_v21 = vrot.slane %v1872_v15, 2  ;;  %v1866_v22 = vmax.f32 %v1779_v10, %v1865_v37  ;;  %v2015_v58 = vsel %vm1901_vm5, %v1864_v55, %v2014_v48  ;;  %v2039_v10 = vpop.permute.xlu0 %2038 }
 0x37f   : > { %v1874_v33 = vmax.f32 %v1872_v15, %v1873_v21  ;;  %v1867_v34 = vrot.slane %v1866_v22, 2  ;;  %v2044_v12 = vpop.permute.xlu1 %2043 }
 0x381   : > { %v1868_v40 = vmax.f32 %v1866_v22, %v1867_v34  ;;  %v1875_v41 = vrot.slane %v1874_v33, 1  ;;  %v2054_v22 = vpop.permute.xlu0 %2053 }
 0x383   : > { %v1869_v46 = vrot.slane %v1868_v40, 1  ;;  %v1876_v52 = vmax.f32 %v1874_v33, %v1875_v41  ;;  %v2049_v16 = vpop.permute.xlu1 %2048 }
 0x385   : > { %v1870_v57 = vmax.f32 %v1868_v40, %v1869_v46 }
 0x387   : > { %v2016_v62 = vsel %vm1903_vm6, %v1870_v57, %v2015_v58 }
 0x388   : > { %v2017_v0 = vsel %vm1905_vm7, %v1876_v52, %v2016_v62 }
 0x389   : > { %2084 = vmatprep.subr.mxu1 %v2017_v0 }
 0x38a   : > { %2085 = vmatpush1.xpose.msra.mxu1 %v2023_v3 }
 0x38b   : > { %2086 = vmatprep.subr.mxu1 %v2010_v5 }
 0x38e   : > { %2087 = vmatpush1.xpose.msra.mxu1 %v2022_v27 }
 0x391   : > { %2121 = vmatmul.mubr.f32.vlgmr.msra.gmra.mxu1 %v2024_v26 }
 0x392   : > { %2125 = vmatprep.mubr.f32.mxu1 %v2027_v61 }
 0x395   : > { %2126 = vmatmul.mubr.f32.gmra.mxu1 %v2026_v7 }
 0x396   : > { %2130 = vmatprep.mubr.f32.mxu1 %v2029_v20 }
 0x399   : > { %2131 = vmatmul.mubr.f32.gmra.mxu1 %v2028_v8 }
 0x39a   : > { %2135 = vmatprep.mubr.f32.mxu1 %v2031_v9 }
 0x39d   : > { %2136 = vmatmul.mubr.f32.gmra.mxu1 %v2030_v29 }
 0x451   : > { %v2122_v11 = vpop.f32.mrf.mxu1 }
 0x452   : > { %v2123_v32 = vadd.f32 %v2122_v11, %v2039_v10 }
 0x453   : > { %v2124_v13 = vpop.f32.mrf.mxu1 }
 0x454   : > { %v2141_v50 = vmax.f32 %v2123_v32, 0.0 }
 0x455   : > { %v2127_v14 = vpop.f32.mrf.mxu1 }
 0x456   : > { %2146 = vst.msk [vmem:[%s422_s21] sm:$0xff] %vm2145_vm9, %v2141_v50  ;;  %v2128_v15 = vadd.f32 %v2127_v14, %v2044_v12 }
 0x457   : > { %v2129_v37 = vpop.f32.mrf.mxu1 }
 0x458   : > { %v2142_v17 = vmax.f32 %v2128_v15, 0.0 }
 0x459   : > { %v2132_v18 = vpop.f32.mrf.mxu1 }
 0x45a   : > { %2147 = vst.msk [vmem:[%s422_s21 + $0x8] sm:$0xff] %vm2145_vm9, %v2142_v17  ;;  %v2133_v31 = vadd.f32 %v2132_v18, %v2049_v16 }
 0x45b   : > { %v2134_v60 = vpop.f32.mrf.mxu1 }
 0x45c   : > { %v2143_v19 = vmax.f32 %v2133_v31, 0.0 }
 0x45d   : > { %v2137_v21 = vpop.f32.mrf.mxu1 }
 0x45e   : > { %2148 = vst.msk [vmem:[%s422_s21 + $0x10] sm:$0xff] %vm2145_vm9, %v2143_v19  ;;  %v2138_v23 = vadd.f32 %v2137_v21, %v2054_v22 }
 0x45f   : > { %v2139_v42 = vpop.f32.mrf.mxu1 }
 0x460   : > { %v2144_v25 = vmax.f32 %v2138_v23, 0.0 }
 0x462   : > { %2149 = vst.msk [vmem:[%s422_s21 + $0x18] sm:$0xff] %vm2145_vm9, %v2144_v25 }
 0x463 PF: > { %s21_s19 = sadd.s32 1, %s2554_s19   ;;  %s3148_s17 = smov %s2550_s18 }
 0x464   : > { %p18_p5 = scmp.ge.s32.totalorder %s21_s19, 4   ;;  %s3149_s18 = smov %s3151_s20 }
 0x466   :  { %20 = sbr.rel (!%p18_p5) target bundleno = 2 (0x2), region = 94 }

</bundles_post_ra>
